<compile_context>
chip_gen: v5e
topology: v5e:2x2
jax: 0.10.0
libtpu: 0.0.40
codegen_flags: <defaults>
</compile_context>

<pallas_src>
import jax
import jax.numpy as jnp
import numpy as np
from jax.experimental import pallas as pl
from jax.experimental.pallas import tpu as pltpu


def stab_kernel(x_ref, wqkv_ref, bqkv_ref, wu_ref, bu_ref, gamma_ref, o_ref):
    # x_ref block: [1, C, N] (one batch element per grid step), channels-first.
    x = x_ref[0].astype(jnp.float32)                                     # [C, N]
    C2 = wu_ref.shape[1]

    # Fused query/key/value 1x1x1 convs == one channel matmul + one bias add.
    qkv = jnp.dot(wqkv_ref[...], x,
                  preferred_element_type=jnp.float32) + bqkv_ref[...]    # [3*C2, N]
    q = qkv[0:C2]                                                        # [C2, N]
    k = qkv[C2:2 * C2]                                                   # [C2, N]
    v = qkv[2 * C2:3 * C2].astype(jnp.bfloat16)                          # [C2, N]

    # s[m, n] = <q_m, k_n>: contract the channel dim of both operands directly.
    # Only a tiny [C2, N] operand is (implicitly) transposed; the [N, N]
    # attention tile is never transposed anywhere in this kernel.
    s = jax.lax.dot_general(q, k, (((0,), (0,)), ((), ())),
                            preferred_element_type=jnp.float32)          # [N, N]

    # Stabilized row softmax over the key axis n (last dim, lane axis).
    # Normalization uses the EUP approx reciprocal + a VPU multiply instead of
    # a full-rate divide over the [N, N] tile.
    s = s - jnp.max(s, axis=-1, keepdims=True)
    e = jnp.exp(s)
    inv = pl.reciprocal(jnp.sum(e, axis=-1, keepdims=True), approx=True)  # [N, 1]
    attn = (e * inv).astype(jnp.bfloat16)                                # [N, N]

    # torch: out = bmm(value, attention) -> out[c, n] = sum_m v[c, m]*attn[m, n]
    # == plain V @ Attn (K = N on the MXU, bf16 inputs, f32 accumulation).
    out = jnp.dot(v, attn, preferred_element_type=jnp.float32)           # [C2, N]

    # up_conv (1x1x1): C2 -> C, then residual with learnable gamma.
    up = jnp.dot(wu_ref[...], out,
                 preferred_element_type=jnp.float32) + bu_ref[...]       # [C, N]
    o_ref[0] = (gamma_ref[0, 0] * up + x).astype(o_ref.dtype)

    # TODO(synk): for large N (T*W*H >~ 2k) restructure flash-style (query-tile
    # grid axis + kv inner loop with m/l/acc VMEM scratch) so the [N, N] tile
    # never materializes -- required for v7x's 64 MiB VMEM; at N=256 the full
    # tile is ~0.4 MiB and fits comfortably under every scoped default.


def spatial_temporal_attention(x, params):
    """x: [B, C, T, W, H] (PyTorch layout). Returns the same layout."""
    B, C, T, W, H = x.shape
    N = T * W * H
    wqkv, bqkv, wu, bu, gamma = params
    C2 = wu.shape[1]

    x_bcn = x.reshape(B, C, N)  # channels-first flatten; no transpose needed.

    def rep(shape):  # whole (small) array replicated to every grid step
        return pl.BlockSpec(shape, lambda b: (0,) * len(shape))

    out_bcn = pl.pallas_call(
        stab_kernel,
        out_shape=jax.ShapeDtypeStruct((B, C, N), x.dtype),
        grid=(B,),
        in_specs=[
            pl.BlockSpec((1, C, N), lambda b: (b, 0, 0)),     # x, one batch per step
            rep((3 * C2, C)),                                 # fused qkv weight
            rep((3 * C2, 1)),                                 # fused qkv bias
            rep((C, C2)),                                     # up_conv weight
            rep((C, 1)),                                      # up_conv bias
            pl.BlockSpec((1, 1), lambda b: (0, 0),
                         memory_space=pltpu.MemorySpace.SMEM),  # gamma scalar
        ],
        out_specs=pl.BlockSpec((1, C, N), lambda b: (b, 0, 0)),
        # Batch axis is parallel: with B=2 each batch element maps to one of
        # v7x's two TensorCores; on v5e/v6e it is a short serial loop.
        compiler_params=pltpu.CompilerParams(
            dimension_semantics=("parallel",)),
    )(x_bcn, wqkv, bqkv, wu, bu, gamma)

    return out_bcn.reshape(B, C, T, W, H)


def reference(x_bcn, params):
    """Pure-JAX f32 reference in the same channels-first [B, C, N] layout."""
    wqkv, bqkv, wu, bu, gamma = params
    C2 = wu.shape[1]
    qkv = jnp.einsum('oc,bcn->bon', wqkv, x_bcn) + bqkv[None, :, :]
    q, k, v = qkv[:, :C2], qkv[:, C2:2 * C2], qkv[:, 2 * C2:]
    s = jnp.einsum('bcm,bcn->bmn', q, k)          # s[b,m,n] = <q_m, k_n>
    a = jax.nn.softmax(s, axis=-1)                # softmax over the key axis n
    out = jnp.einsum('bcm,bmn->bcn', v, a)        # out[b,c,n] = sum_m v[c,m]*a[m,n]
    up = jnp.einsum('oc,bcn->bon', wu, out) + bu[None, :, :]
    return gamma[0, 0] * up + x_bcn


if __name__ == "__main__":
    B, C, T, W, H = 2, 8, 4, 8, 8
    C2 = C // 2
    N = T * W * H  # 256

    key = jax.random.PRNGKey(0)
    ks = jax.random.split(key, 9)

    # Input in PyTorch convention [B, C, T, W, H]
    x = jax.random.normal(ks[0], (B, C, T, W, H), jnp.float32)

    # Conv3d 1x1x1 weights [out, in, 1, 1, 1] stored as [out, in] matrices
    # (exactly the channels-first matmul form used by the kernel).
    wq = jax.random.normal(ks[1], (C2, C), jnp.float32) * 0.1
    bq = jax.random.normal(ks[2], (C2, 1), jnp.float32) * 0.1
    wk = jax.random.normal(ks[3], (C2, C), jnp.float32) * 0.1
    bk = jax.random.normal(ks[4], (C2, 1), jnp.float32) * 0.1
    wv = jax.random.normal(ks[5], (C2, C), jnp.float32) * 0.1
    bv = jax.random.normal(ks[6], (C2, 1), jnp.float32) * 0.1
    wu = jax.random.normal(ks[7], (C, C2), jnp.float32) * 0.1
    bu = jax.random.normal(ks[8], (C, 1), jnp.float32) * 0.1
    # Module __init__ sets gamma = 0 (identity residual); use 0.5 here so the
    # attention path actually contributes to the checked output.
    gamma = jnp.full((1, 1), 0.5, jnp.float32)

    # Fuse q/k/v projections into a single [3*C2, C] weight + [3*C2, 1] bias.
    wqkv = jnp.concatenate([wq, wk, wv], axis=0)
    bqkv = jnp.concatenate([bq, bk, bv], axis=0)
    params = (wqkv, bqkv, wu, bu, gamma)

    out = jax.block_until_ready(spatial_temporal_attention(x, params))
    assert out.shape == (B, C, T, W, H)

    ref_bcn = reference(x.reshape(B, C, N), params)
    np.testing.assert_allclose(np.asarray(out.reshape(B, C, N)),
                               np.asarray(ref_bcn), rtol=2e-2, atol=2e-2)

    print("KERNEL_OK")
</pallas_src>

<mosaic_0001>
module attributes {stable_mosaic.version = 11 : i64} {
  func.func @stab_kernel(%arg0: i32, %arg1: memref<1x8x256xf32, #tpu.memory_space<vmem>>, %arg2: memref<12x8xf32, #tpu.memory_space<vmem>>, %arg3: memref<12x1xf32, #tpu.memory_space<vmem>>, %arg4: memref<8x4xf32, #tpu.memory_space<vmem>>, %arg5: memref<8x1xf32, #tpu.memory_space<vmem>>, %arg6: memref<1x1xf32, #tpu.memory_space<smem>>, %arg7: memref<1x8x256xf32, #tpu.memory_space<vmem>>) attributes {dimension_semantics = [#tpu.dimension_semantics<parallel>], iteration_bounds = array<i64: 2>, scalar_prefetch = 0 : i64, scratch_operands = 0 : i64, tpu.core_type = #tpu.core_type<tc>, window_params = [{transform_indices = @transform_0, window_bounds = array<i64: 1, 8, 256>}, {pipeline_mode = #tpu.pipeline_mode<synchronous>, transform_indices = @transform_1, window_bounds = array<i64: 12, 8>}, {pipeline_mode = #tpu.pipeline_mode<synchronous>, transform_indices = @transform_2, window_bounds = array<i64: 12, 1>}, {pipeline_mode = #tpu.pipeline_mode<synchronous>, transform_indices = @transform_3, window_bounds = array<i64: 8, 4>}, {pipeline_mode = #tpu.pipeline_mode<synchronous>, transform_indices = @transform_4, window_bounds = array<i64: 8, 1>}, {transform_indices = @transform_5, window_bounds = array<i64: 1, 1>}, {transform_indices = @transform_6, window_bounds = array<i64: 1, 8, 256>}]} {
    %c0 = arith.constant 0 : index
    %c0_0 = arith.constant 0 : index
    %c0_1 = arith.constant 0 : index
    %0 = vector.load %arg1[%c0, %c0_0, %c0_1] : memref<1x8x256xf32, #tpu.memory_space<vmem>>, vector<1x8x256xf32>
    %1 = vector.shape_cast %0 : vector<1x8x256xf32> to vector<8x256xf32>
    %c0_2 = arith.constant 0 : index
    %c0_3 = arith.constant 0 : index
    %2 = vector.load %arg2[%c0_2, %c0_3] : memref<12x8xf32, #tpu.memory_space<vmem>>, vector<12x8xf32>
    %cst = arith.constant dense<0.000000e+00> : vector<12x256xf32>
    %3 = tpu.matmul %2, %1, %cst {dimension_numbers = #tpu.dot_dimension_numbers<[1], [0], [0], [1], [0, 0, 1, 1], [], []>} : vector<12x8xf32>, vector<8x256xf32>, vector<12x256xf32> -> vector<12x256xf32>
    %c0_4 = arith.constant 0 : index
    %c0_5 = arith.constant 0 : index
    %4 = vector.load %arg3[%c0_4, %c0_5] : memref<12x1xf32, #tpu.memory_space<vmem>>, vector<12x1xf32>
    %5 = vector.broadcast %4 : vector<12x1xf32> to vector<12x256xf32>
    %6 = arith.addf %3, %5 : vector<12x256xf32>
    %7 = vector.extract_strided_slice %6 {offsets = [0, 0], sizes = [4, 256], strides = [1, 1]} : vector<12x256xf32> to vector<4x256xf32>
    %8 = vector.extract_strided_slice %6 {offsets = [4, 0], sizes = [4, 256], strides = [1, 1]} : vector<12x256xf32> to vector<4x256xf32>
    %9 = vector.extract_strided_slice %6 {offsets = [8, 0], sizes = [4, 256], strides = [1, 1]} : vector<12x256xf32> to vector<4x256xf32>
    %10 = arith.truncf %9 : vector<4x256xf32> to vector<4x256xbf16>
    %cst_6 = arith.constant dense<0.000000e+00> : vector<256x256xf32>
    %11 = tpu.matmul %7, %8, %cst_6 {dimension_numbers = #tpu.dot_dimension_numbers<[0], [0], [1], [1], [0, 1, 1, 1], [], []>} : vector<4x256xf32>, vector<4x256xf32>, vector<256x256xf32> -> vector<256x256xf32>
    %cst_7 = arith.constant dense<0xFF800000> : vector<256xf32>
    %12 = vector.multi_reduction <maximumf>, %11, %cst_7 [1] : vector<256x256xf32> to vector<256xf32>
    %13 = vector.shape_cast %12 : vector<256xf32> to vector<256x1xf32>
    %14 = vector.broadcast %13 : vector<256x1xf32> to vector<256x256xf32>
    %15 = arith.subf %11, %14 : vector<256x256xf32>
    %16 = math.exp %15 : vector<256x256xf32>
    %cst_8 = arith.constant dense<0.000000e+00> : vector<256xf32>
    %17 = vector.multi_reduction <add>, %16, %cst_8 [1] : vector<256x256xf32> to vector<256xf32>
    %18 = vector.shape_cast %17 : vector<256xf32> to vector<256x1xf32>
    %19 = tpu.reciprocal %18 {approx = true} : vector<256x1xf32> -> vector<256x1xf32>
    %20 = vector.broadcast %19 : vector<256x1xf32> to vector<256x256xf32>
    %21 = arith.mulf %16, %20 : vector<256x256xf32>
    %22 = arith.truncf %21 : vector<256x256xf32> to vector<256x256xbf16>
    %cst_9 = arith.constant dense<0.000000e+00> : vector<4x256xf32>
    %23 = tpu.matmul %10, %22, %cst_9 {dimension_numbers = #tpu.dot_dimension_numbers<[1], [0], [0], [1], [0, 0, 1, 1], [], []>} : vector<4x256xbf16>, vector<256x256xbf16>, vector<4x256xf32> -> vector<4x256xf32>
    %c0_10 = arith.constant 0 : index
    %c0_11 = arith.constant 0 : index
    %24 = vector.load %arg4[%c0_10, %c0_11] : memref<8x4xf32, #tpu.memory_space<vmem>>, vector<8x4xf32>
    %cst_12 = arith.constant dense<0.000000e+00> : vector<8x256xf32>
    %25 = tpu.matmul %24, %23, %cst_12 {dimension_numbers = #tpu.dot_dimension_numbers<[1], [0], [0], [1], [0, 0, 1, 1], [], []>} : vector<8x4xf32>, vector<4x256xf32>, vector<8x256xf32> -> vector<8x256xf32>
    %c0_13 = arith.constant 0 : index
    %c0_14 = arith.constant 0 : index
    %26 = vector.load %arg5[%c0_13, %c0_14] : memref<8x1xf32, #tpu.memory_space<vmem>>, vector<8x1xf32>
    %27 = vector.broadcast %26 : vector<8x1xf32> to vector<8x256xf32>
    %28 = arith.addf %25, %27 : vector<8x256xf32>
    %c0_15 = arith.constant 0 : index
    %c0_16 = arith.constant 0 : index
    %29 = memref.load %arg6[%c0_15, %c0_16] : memref<1x1xf32, #tpu.memory_space<smem>>
    %30 = vector.broadcast %29 : f32 to vector<8x256xf32>
    %31 = arith.mulf %30, %28 : vector<8x256xf32>
    %32 = arith.addf %31, %1 : vector<8x256xf32>
    %c0_17 = arith.constant 0 : index
    %c0_18 = arith.constant 0 : index
    %c0_19 = arith.constant 0 : index
    %33 = vector.load %arg7[%c0_17, %c0_18, %c0_19] : memref<1x8x256xf32, #tpu.memory_space<vmem>>, vector<1x8x256xf32>
    %34 = vector.shape_cast %33 : vector<1x8x256xf32> to vector<8x256xf32>
    %35 = vector.shape_cast %32 : vector<8x256xf32> to vector<1x8x256xf32>
    tpu.vector_store %arg7[%c0_17, %c0_18, %c0_19], %35 {strides = array<i32>} : memref<1x8x256xf32, #tpu.memory_space<vmem>>, vector<1x8x256xf32>,
    return
  }
  func.func @transform_0(%arg0: i32) -> (i32, i32, i32) {
    %c0_i32 = arith.constant 0 : i32
    %c0_i32_0 = arith.constant 0 : i32
    %c0_i32_1 = arith.constant 0 : i32
    return %arg0, %c0_i32, %c0_i32_0 : i32, i32, i32
  }
  func.func @transform_1(%arg0: i32) -> (i32, i32) {
    %c0_i32 = arith.constant 0 : i32
    %c0_i32_0 = arith.constant 0 : i32
    %c0_i32_1 = arith.constant 0 : i32
    return %c0_i32, %c0_i32_0 : i32, i32
  }
  func.func @transform_2(%arg0: i32) -> (i32, i32) {
    %c0_i32 = arith.constant 0 : i32
    %c0_i32_0 = arith.constant 0 : i32
    %c0_i32_1 = arith.constant 0 : i32
    return %c0_i32, %c0_i32_0 : i32, i32
  }
  func.func @transform_3(%arg0: i32) -> (i32, i32) {
    %c0_i32 = arith.constant 0 : i32
    %c0_i32_0 = arith.constant 0 : i32
    %c0_i32_1 = arith.constant 0 : i32
    return %c0_i32, %c0_i32_0 : i32, i32
  }
  func.func @transform_4(%arg0: i32) -> (i32, i32) {
    %c0_i32 = arith.constant 0 : i32
    %c0_i32_0 = arith.constant 0 : i32
    %c0_i32_1 = arith.constant 0 : i32
    return %c0_i32, %c0_i32_0 : i32, i32
  }
  func.func @transform_5(%arg0: i32) -> (i32, i32) {
    %c0_i32 = arith.constant 0 : i32
    %c0_i32_0 = arith.constant 0 : i32
    %c0_i32_1 = arith.constant 0 : i32
    return %c0_i32, %c0_i32_0 : i32, i32
  }
  func.func @transform_6(%arg0: i32) -> (i32, i32, i32) {
    %c0_i32 = arith.constant 0 : i32
    %c0_i32_0 = arith.constant 0 : i32
    %c0_i32_1 = arith.constant 0 : i32
    return %arg0, %c0_i32, %c0_i32_0 : i32, i32, i32
  }
}

</mosaic_0001>

<bundles_post_ra>
// kernel: tpu_custom_call.1
= control target key start
LH: loop header
LB: loop body
LE: loop exit
PB: predicated region body
PF: predicated region fallthrough
CT: control target
= control target key end

     0   :  { %s2752_s0 = inlined_call_operand.vmem [shape: f32[2,8,256], index: 0, kind: input, shape index: {}]   ;;  %s2753_s1 = inlined_call_operand.vmem [shape: f32[12,8], index: 1, kind: input, shape index: {}]   ;;  %s2754_s2 = inlined_call_operand.vmem [shape: f32[12,1], index: 2, kind: input, shape index: {}]   ;;  %s2755_s3 = inlined_call_operand.vmem [shape: f32[8,4], index: 3, kind: input, shape index: {}]   ;;  %s2756_s4 = inlined_call_operand.vmem [shape: f32[8,1], index: 4, kind: input, shape index: {}]   ;;  %s2757_s5 = inlined_call_operand.<no memory space> [shape: f32[1,1], index: 5, kind: input, shape index: {}]   ;;  %s2758_s6 = inlined_call_operand.hbm [shape: f32[2,8,256], index: 6, kind: output, shape index: {}]  }
   0x1   :  { %11 = sst [smem:[#allocation2]] %s2757_s5 }
   0x2   :  { %12 = vsyncpa [#allocation4], 0 }
   0x3   :  { %14 = vsyncpa [#allocation4 + $0x1], 0  ;;  %s1852_s23 = smov 0   ;;  %s1854_s24 = smov 0  }
   0x4   :  { %s1856_s25 = smov 0   ;;  %s1858_s26 = smov 0  }
   0x5 LB: > { %s1873_s5 = sadd.s32 4294967295, %s1811_s26   ;;  %s1422_s27 = sadd.s32 4294967294, %s1811_s26   ;;  %s1811_s26 = sphi %s1858_s26, %s2877_s26   ;;  %s1807_s25 = sphi %s1856_s25, %s2876_s25   ;;  %s1803_s24 = sphi %s1854_s24, %s2875_s24   ;;  %s1799_s23 = sphi %s1852_s23, %s2874_s23  }
   0x6   : > { %s1877_s28 = sadd.s32 1, %s1811_s26   ;;  %s158_s29 = sadd.s32 1, %s1807_s25 }
   0x7   : > { %s155_s30 = ssub.s32 %s1811_s26, %s1877_s28  ;;  %p168_p0 = scmp.ne.s32.totalorder %s1807_s25, %s1803_s24 }
   0x8   : > { %p156_p1 = scmp.eq.s32.totalorder %s155_s30, 0  ;;  %p169_p2 = scmp.eq.s32.totalorder %s1873_s5, 1 }
   0x9   : > { %p174_p3 = scmp.ne.s32.totalorder %s1803_s24, %s1799_s23  ;;  %p175_p4 = scmp.eq.s32.totalorder %s1422_s27, 1 }
   0xa   : > { %s1888_s7 = scalar_select %p156_p1, %s1807_s25, %s158_s29  }
   0xb   : > { %p1890_p5 = por %p169_p2, %p168_p0  ;;  %p1894_p6 = por %p175_p4, %p174_p3 }
   0xc   : > { %p1425_p7 = scmp.ge.s32.totalorder %s1811_s26, 1  ;;  %p216_p8 = scmp.lt.s32.totalorder %s1811_s26, 3 }
   0xe   : > { %p217_p9 = pnand %p1425_p7, %p216_p8 }
  0x10   : > { %220 = sbr.rel (%p217_p9) target bundleno = 1522 (0x5f2), region = 44 }
  0x15   : > { %p246_p10 = scmp.lt.s32.totalorder %s1873_s5, 1  ;;  %v255_v0 = vld [vmem:[%s2754_s2] sm:$0xff]  ;;  %v1813_v1 = vmov 0   ;;  %vm267_vm0 = vcmask 64512   ;;  %v254_v5 = vld [vmem:[%s2753_s1 + $0x8] sm:$0xf] }
  0x16   : > { %1553 = vset.pattern.permute.xlu0 %v1813_v1  ;;  %1554 = vset.pattern.permute.xlu2 %v1813_v1  ;;  %v253_v2 = vld [vmem:[%s2753_s1] sm:$0xff]  ;;  %vm487_vm1 = vcmask 1043456   ;;  %vm390_vm2 = vcmask 31744   ;;  %s1338_s11 = sld [smem:[#allocation2]]  ;;  %s1509_s15 = sshll.u32 %s1873_s5, 4 }
  0x17   : > { %s247_s12 = scalar_select %p246_p10, %s1873_s5, 1  ;;  %259 = vperm.xlu0 %1553, %v255_v0  }
  0x18   : > { %s1358_s19 = scalar_lea.hbm %s2758_s6, %s1509_s15  ;;  %s1769_s10 = scalar_lea.hbm %s2758_s6, 32 }
  0x19   : > { %s1508_s13 = sshll.u32 %s247_s12, 4  ;;  %s243_s12 = sand.u32 1, %s1803_s24  }
  0x1a   : > { %s1908_s16 = scalar_lea.vmem %s2752_s0, %s1508_s13  ;;  %s1426_s13 = sshll.u32 %s243_s12, 4 }
  0x1b   : > { %v251_v3 = vld [vmem:[%s1908_s16] sm:$0xff]  ;;  %v252_v4 = vld [vmem:[%s1908_s16 + $0x8] sm:$0xff]  ;;  %s245_s14 = scalar_lea.vmem [#allocation3], %s1426_s13  ;;  %s1362_s21 = sshll.u32 %s1358_s19, 4  ;;  %s1363_s21 = int_to_ptr.hbm [resolvable:$true] %s1362_s21 }
  0x1c   : > { %289 = vmatpush.msra.mxu0 %v251_v3  ;;  %312 = vmatpush.msra.mxu1 %v252_v4  ;;  %s1360_s20 = sshll.u32 %s245_s14, 4  ;;  %s1347_s22 = scalar_lea.sflag [#allocation4], %s243_s12  ;;  %s1361_s20 = int_to_ptr.vmem [resolvable:$true] %s1360_s20 }
  0x1d   : > { %1429 = vmatmul.msk.f32.vlgmr.msra.gmra.mxu0 %vm267_vm0, %v253_v2  ;;  %1431 = vmatmul.msk.f32.vlgmr.msra.gmra.mxu1 %vm267_vm0, %v253_v2  ;;  %s1763_s27 = sshra.s32 %s1363_s21, 4  ;;  %s1764_s27 = int_to_ptr.hbm [resolvable:$true] %s1763_s27 }
  0x1e   : > { %s1765_s29 = scalar_lea.hbm %s1764_s27, 16  ;;  %p1770_p0 = scmp.lt.s32.totalorder %s1764_s27, %s2758_s6 }
  0x1f   : > { %p1766_p11 = scmp.ne.s32.totalorder %s1764_s27, %s1765_s29  ;;  %p1771_p1 = scmp.lt.s32.totalorder %s1769_s10, %s1765_s29 }
  0x21   : > { %p1767_p12 = pnand %p1766_p11, %p1890_p5  ;;  %p1772_p2 = por %p1771_p1, %p1770_p0 }
  0x23   : > { %p1768_p13 = pneg %p1767_p12 }
  0x25   : > { %1430 = vmatmul.msk.f32.gmra.mxu0 %vm267_vm0, %v254_v5  ;;  %1432 = vmatmul.msk.f32.gmra.mxu1 %vm267_vm0, %v254_v5  ;;  %p1773_p3 = pnand %p1772_p2, %p1768_p13 }
  0x89   : > { %v260_v6 = vpop.permute.xlu0 %259 }
  0x9a   : > { %v291_v7 = vpop.f32.mrf.mxu0  ;;  %v314_v8 = vpop.f32.mrf.mxu1 }
  0x9b   : > { %v292_v9 = vadd.f32 %v291_v7, %v260_v6  ;;  %v315_v10 = vadd.f32 %v314_v8, %v260_v6 }
  0x9d   : > { %v388_v11 = vrot.slane %v292_v9, 4  ;;  %v389_v12 = vrot.slane %v315_v10, 4  ;;  %354 = vxpose.xlu1.b32.start.end [1/1] (short) %v315_v10, 128  ;;  %322 = vxpose.xlu0.b32.start.end [1/1] (short) %v292_v9, 128 }
  0x9f   : > { %1433 = vmatpush.msk.msrb.mxu0 %vm487_vm1, %v388_v11  ;;  %1510 = vmatpush.msk.msra.mxu2 %vm487_vm1, %v388_v11 }
  0xa0   : > { %1466 = vmatpush.msk.msrb.mxu1 %vm487_vm1, %v389_v12  ;;  %1511 = vmatpush.msk.msra.mxu3 %vm487_vm1, %v389_v12 }
  0xa2   : > { %v2002_v53 = vpop.f32.mrf.mxu0  ;;  %v2004_v54 = vpop.f32.mrf.mxu1 }
  0xa3   : > { %2796 = vst [vmem:[#allocation6_spill] sm:$0xff] %v2002_v53 }
  0xa4   : > { %2797 = vst [vmem:[#allocation7_spill] sm:$0xff] %v2004_v54 }
 0x141   : > { %v338_v13 = vpop.trf.xlu0  ;;  %v370_v26 = vpop.trf.xlu1 }
 0x142   : > { %1434 = vmatmul.msk.f32.vlgmr.msrb.gmra.mxu0 %vm390_vm2, %v338_v13  ;;  %1467 = vmatmul.msk.f32.vlgmr.msrb.gmra.mxu1 %vm390_vm2, %v338_v13 }
 0x149   : > { %v339_v14 = vpop.trf.xlu0  ;;  %v371_v29 = vpop.trf.xlu1 }
 0x14a   : > { %1435 = vmatmul.msk.f32.gmra.mxu0 %vm390_vm2, %v339_v14  ;;  %1468 = vmatmul.msk.f32.gmra.mxu1 %vm390_vm2, %v339_v14 }
 0x151   : > { %v340_v15 = vpop.trf.xlu0  ;;  %v372_v31 = vpop.trf.xlu1 }
 0x152   : > { %1436 = vmatmul.msk.f32.gmra.mxu0 %vm390_vm2, %v340_v15  ;;  %1469 = vmatmul.msk.f32.gmra.mxu1 %vm390_vm2, %v340_v15 }
 0x159   : > { %v341_v16 = vpop.trf.xlu0  ;;  %v373_v32 = vpop.trf.xlu1 }
 0x15a   : > { %1437 = vmatmul.msk.f32.gmra.mxu0 %vm390_vm2, %v341_v16  ;;  %1470 = vmatmul.msk.f32.gmra.mxu1 %vm390_vm2, %v341_v16 }
 0x161   : > { %v342_v17 = vpop.trf.xlu0  ;;  %v374_v33 = vpop.trf.xlu1 }
 0x162   : > { %1438 = vmatmul.msk.f32.gmra.mxu0 %vm390_vm2, %v342_v17  ;;  %1471 = vmatmul.msk.f32.gmra.mxu1 %vm390_vm2, %v342_v17 }
 0x169   : > { %v343_v18 = vpop.trf.xlu0  ;;  %v375_v34 = vpop.trf.xlu1 }
 0x16a   : > { %1439 = vmatmul.msk.f32.gmra.mxu0 %vm390_vm2, %v343_v18  ;;  %1472 = vmatmul.msk.f32.gmra.mxu1 %vm390_vm2, %v343_v18 }
 0x171   : > { %v344_v19 = vpop.trf.xlu0  ;;  %v376_v35 = vpop.trf.xlu1 }
 0x172   : > { %1440 = vmatmul.msk.f32.gmra.mxu0 %vm390_vm2, %v344_v19  ;;  %1473 = vmatmul.msk.f32.gmra.mxu1 %vm390_vm2, %v344_v19 }
 0x179   : > { %v345_v20 = vpop.trf.xlu0  ;;  %v377_v36 = vpop.trf.xlu1 }
 0x17a   : > { %1441 = vmatmul.msk.f32.gmra.mxu0 %vm390_vm2, %v345_v20  ;;  %1474 = vmatmul.msk.f32.gmra.mxu1 %vm390_vm2, %v345_v20 }
 0x181   : > { %v346_v21 = vpop.trf.xlu0  ;;  %v378_v37 = vpop.trf.xlu1 }
 0x182   : > { %1442 = vmatmul.msk.f32.gmra.mxu0 %vm390_vm2, %v346_v21  ;;  %1475 = vmatmul.msk.f32.gmra.mxu1 %vm390_vm2, %v346_v21 }
 0x189   : > { %v347_v22 = vpop.trf.xlu0  ;;  %v379_v38 = vpop.trf.xlu1 }
 0x18a   : > { %1443 = vmatmul.msk.f32.gmra.mxu0 %vm390_vm2, %v347_v22  ;;  %1476 = vmatmul.msk.f32.gmra.mxu1 %vm390_vm2, %v347_v22 }
 0x191   : > { %v348_v23 = vpop.trf.xlu0  ;;  %v380_v39 = vpop.trf.xlu1 }
 0x192   : > { %1444 = vmatmul.msk.f32.gmra.mxu0 %vm390_vm2, %v348_v23  ;;  %1477 = vmatmul.msk.f32.gmra.mxu1 %vm390_vm2, %v348_v23 }
 0x199   : > { %v349_v24 = vpop.trf.xlu0  ;;  %v381_v40 = vpop.trf.xlu1 }
 0x19a   : > { %1445 = vmatmul.msk.f32.vlgmr.msra.gmra.mxu2 %vm390_vm2, %v349_v24  ;;  %1478 = vmatmul.msk.f32.vlgmr.msra.gmra.mxu3 %vm390_vm2, %v349_v24 }
 0x1a1   : > { %v350_v25 = vpop.trf.xlu0  ;;  %v382_v43 = vpop.trf.xlu1 }
 0x1a2   : > { %1446 = vmatmul.msk.f32.gmra.mxu2 %vm390_vm2, %v350_v25  ;;  %1479 = vmatmul.msk.f32.gmra.mxu3 %vm390_vm2, %v350_v25 }
 0x1a9   : > { %v351_v27 = vpop.trf.xlu0  ;;  %v383_v13 = vpop.trf.xlu1 }
 0x1aa   : > { %1447 = vmatmul.msk.f32.gmra.mxu2 %vm390_vm2, %v351_v27  ;;  %1480 = vmatmul.msk.f32.gmra.mxu3 %vm390_vm2, %v351_v27 }
 0x1b1   : > { %v352_v28 = vpop.trf.xlu0  ;;  %v384_v20 = vpop.trf.xlu1 }
 0x1b2   : > { %1448 = vmatmul.msk.f32.gmra.mxu2 %vm390_vm2, %v352_v28  ;;  %1481 = vmatmul.msk.f32.gmra.mxu3 %vm390_vm2, %v352_v28 }
 0x1b9   : > { %v353_v30 = vpop.trf.xlu0  ;;  %v385_v25 = vpop.trf.xlu1 }
 0x1ba   : > { %1449 = vmatmul.msk.f32.gmra.mxu2 %vm390_vm2, %v353_v30  ;;  %1482 = vmatmul.msk.f32.gmra.mxu3 %vm390_vm2, %v353_v30 }
 0x1bf   : > { %v2016_v60 = vpop.f32.mrf.mxu0  ;;  %v2018_v61 = vpop.f32.mrf.mxu1 }
 0x1c2   : > { %1450 = vmatmul.msk.f32.gmra.mxu2 %vm390_vm2, %v370_v26  ;;  %1483 = vmatmul.msk.f32.gmra.mxu3 %vm390_vm2, %v370_v26 }
 0x1c7   : > { %v2026_v1 = vpop.f32.mrf.mxu0  ;;  %v2028_v2 = vpop.f32.mrf.mxu1 }
 0x1ca   : > { %1451 = vmatmul.msk.f32.gmra.mxu2 %vm390_vm2, %v371_v29  ;;  %1484 = vmatmul.msk.f32.gmra.mxu3 %vm390_vm2, %v371_v29 }
 0x1cf   : > { %v2034_v5 = vpop.f32.mrf.mxu0  ;;  %v2036_v6 = vpop.f32.mrf.mxu1 }
 0x1d2   : > { %1452 = vmatmul.msk.f32.gmra.mxu2 %vm390_vm2, %v372_v31  ;;  %1485 = vmatmul.msk.f32.gmra.mxu3 %vm390_vm2, %v372_v31 }
 0x1d7   : > { %v2042_v9 = vpop.f32.mrf.mxu0  ;;  %v2044_v10 = vpop.f32.mrf.mxu1 }
 0x1d8   : > { %2800 = vst [vmem:[#allocation10_spill] sm:$0xff] %v2042_v9 }
 0x1d9   : > { %2801 = vst [vmem:[#allocation11_spill] sm:$0xff] %v2044_v10 }
 0x1da   : > { %1453 = vmatmul.msk.f32.gmra.mxu2 %vm390_vm2, %v373_v32  ;;  %1486 = vmatmul.msk.f32.gmra.mxu3 %vm390_vm2, %v373_v32 }
 0x1df   : > { %v2056_v16 = vpop.f32.mrf.mxu0  ;;  %v2058_v17 = vpop.f32.mrf.mxu1 }
 0x1e2   : > { %1454 = vmatmul.msk.f32.gmra.mxu2 %vm390_vm2, %v374_v33  ;;  %1487 = vmatmul.msk.f32.gmra.mxu3 %vm390_vm2, %v374_v33 }
 0x1e7   : > { %v2066_v21 = vpop.f32.mrf.mxu0  ;;  %v2068_v22 = vpop.f32.mrf.mxu1 }
 0x1ea   : > { %1455 = vmatmul.msk.f32.gmra.mxu2 %vm390_vm2, %v375_v34  ;;  %1488 = vmatmul.msk.f32.gmra.mxu3 %vm390_vm2, %v375_v34 }
 0x1ef   : > { %v2074_v26 = vpop.f32.mrf.mxu0  ;;  %v2076_v27 = vpop.f32.mrf.mxu1 }
 0x1f2   : > { %1456 = vmatmul.msk.f32.gmra.mxu2 %vm390_vm2, %v376_v35  ;;  %1489 = vmatmul.msk.f32.gmra.mxu3 %vm390_vm2, %v376_v35 }
 0x1f7   : > { %v2084_v30 = vpop.f32.mrf.mxu0  ;;  %v2086_v31 = vpop.f32.mrf.mxu1 }
 0x1fa   : > { %1457 = vmatmul.msk.f32.gmra.mxu2 %vm390_vm2, %v377_v36  ;;  %1490 = vmatmul.msk.f32.gmra.mxu3 %vm390_vm2, %v377_v36 }
 0x1ff   : > { %v2096_v36 = vpop.f32.mrf.mxu0 }
 0x202   : > { %1458 = vmatmul.msk.f32.gmra.mxu2 %vm390_vm2, %v378_v37  ;;  %1491 = vmatmul.msk.f32.gmra.mxu3 %vm390_vm2, %v378_v37  ;;  %v2098_v37 = vpop.f32.mrf.mxu1 }
 0x20a   : > { %1459 = vmatmul.msk.f32.gmra.mxu2 %vm390_vm2, %v379_v38  ;;  %1492 = vmatmul.msk.f32.gmra.mxu3 %vm390_vm2, %v379_v38 }
 0x212   : > { %1460 = vmatmul.msk.f32.gmra.mxu2 %vm390_vm2, %v380_v39  ;;  %1493 = vmatmul.msk.f32.gmra.mxu3 %vm390_vm2, %v380_v39 }
 0x21a   : > { %1461 = vmatmul.msk.f32.gmra.mxu2 %vm390_vm2, %v381_v40  ;;  %1494 = vmatmul.msk.f32.gmra.mxu3 %vm390_vm2, %v381_v40 }
 0x21d   : > { %v1978_v41 = vpop.f32.mrf.mxu2  ;;  %v1980_v42 = vpop.f32.mrf.mxu3 }
 0x222   : > { %1462 = vmatmul.msk.f32.gmra.mxu2 %vm390_vm2, %v382_v43  ;;  %1495 = vmatmul.msk.f32.gmra.mxu3 %vm390_vm2, %v382_v43 }
 0x225   : > { %v1984_v44 = vpop.f32.mrf.mxu2  ;;  %v1986_v45 = vpop.f32.mrf.mxu3 }
 0x226   : > { %v754_v46 = vmax.f32 %v1984_v44, %v1986_v45 }
 0x228   : > { %755 = vmax.xlane.f32.xlu2 %v754_v46 }
 0x22a   : > { %1463 = vmatmul.msk.f32.gmra.mxu2 %vm390_vm2, %v383_v13  ;;  %1496 = vmatmul.msk.f32.gmra.mxu3 %vm390_vm2, %v383_v13 }
 0x22d   : > { %v1990_v47 = vpop.f32.mrf.mxu2  ;;  %v1992_v48 = vpop.f32.mrf.mxu3 }
 0x22e   : > { %v757_v49 = vmax.f32 %v1990_v47, %v1992_v48 }
 0x230   : > { %758 = vmax.xlane.f32.xlu2 %v757_v49 }
 0x232   : > { %1464 = vmatmul.msk.f32.gmra.mxu2 %vm390_vm2, %v384_v20  ;;  %1497 = vmatmul.msk.f32.gmra.mxu3 %vm390_vm2, %v384_v20 }
 0x235   : > { %v1996_v50 = vpop.f32.mrf.mxu2  ;;  %v1998_v51 = vpop.f32.mrf.mxu3 }
 0x236   : > { %v760_v52 = vmax.f32 %v1996_v50, %v1998_v51 }
 0x238   : > { %761 = vmax.xlane.f32.xlu1 %v760_v52 }
 0x23a   : > { %1465 = vmatmul.msk.f32.gmra.mxu2 %vm390_vm2, %v385_v25  ;;  %1498 = vmatmul.msk.f32.gmra.mxu3 %vm390_vm2, %v385_v25 }
 0x23d   : > { %v2006_v55 = vpop.f32.mrf.mxu2  ;;  %v2008_v56 = vpop.f32.mrf.mxu3 }
 0x23e   : > { %v763_v57 = vmax.f32 %v2006_v55, %v2008_v56 }
 0x240   : > { %764 = vmax.xlane.f32.xlu2 %v763_v57  ;;  %v2106_v57 = vpop.f32.mrf.mxu0 }
 0x245   : > { %v2012_v58 = vpop.f32.mrf.mxu2  ;;  %v2014_v59 = vpop.f32.mrf.mxu3 }
 0x246   : > { %2798 = vst [vmem:[#allocation8_spill] sm:$0xff] %v2012_v58  ;;  %v766_v62 = vmax.f32 %v2012_v58, %v2014_v59 }
 0x247   : > { %2799 = vst [vmem:[#allocation9_spill] sm:$0xff] %v2014_v59 }
 0x248   : > { %767 = vmax.xlane.f32.xlu1 %v766_v62  ;;  %v2108_v62 = vpop.f32.mrf.mxu1 }
 0x24d   : > { %v2022_v63 = vpop.f32.mrf.mxu2  ;;  %v2024_v0 = vpop.f32.mrf.mxu3 }
 0x255   : > { %v2030_v3 = vpop.f32.mrf.mxu2  ;;  %v2032_v4 = vpop.f32.mrf.mxu3 }
 0x25d   : > { %v2038_v7 = vpop.f32.mrf.mxu2  ;;  %v2040_v8 = vpop.f32.mrf.mxu3 }
 0x265   : > { %v2046_v11 = vpop.f32.mrf.mxu2  ;;  %v2048_v12 = vpop.f32.mrf.mxu3 }
 0x266   : > { %2802 = vst [vmem:[#allocation12_spill] sm:$0xff] %v2048_v12 }
 0x26d   : > { %v2052_v14 = vpop.f32.mrf.mxu2  ;;  %v2054_v15 = vpop.f32.mrf.mxu3 }
 0x275   : > { %v2060_v18 = vpop.f32.mrf.mxu2  ;;  %v2062_v19 = vpop.f32.mrf.mxu3 }
 0x27d   : > { %v2070_v23 = vpop.f32.mrf.mxu2  ;;  %v2072_v24 = vpop.f32.mrf.mxu3 }
 0x285   : > { %v2080_v28 = vpop.f32.mrf.mxu2  ;;  %v2082_v29 = vpop.f32.mrf.mxu3 }
 0x286   : > { %2803 = vst [vmem:[#allocation13_spill] sm:$0xff] %v2080_v28 }
 0x287   : > { %2804 = vst [vmem:[#allocation14_spill] sm:$0xff] %v2082_v29 }
 0x28d   : > { %v2088_v32 = vpop.f32.mrf.mxu2  ;;  %v2090_v33 = vpop.f32.mrf.mxu3 }
 0x295   : > { %v2092_v34 = vpop.f32.mrf.mxu2  ;;  %v2094_v35 = vpop.f32.mrf.mxu3 }
 0x296   : > { %v796_v54 = vmax.f32 %v2092_v34, %v2094_v35 }
 0x29b   : > { %v756_v38 = vpop.xlane.xlu2 %755 }
 0x29c   : > { %v838_v39 = vsub.f32 %v1984_v44, %v756_v38  ;;  %v839_v40 = vsub.f32 %v1986_v45, %v756_v38 }
 0x29d   : > { %v2102_v43 = vpop.f32.mrf.mxu2  ;;  %v2104_v46 = vpop.f32.mrf.mxu3 }
 0x29e   : > { %2805 = vst [vmem:[#allocation15_spill] sm:$0xff] %v2102_v43  ;;  %v926_v49 = vmul.f32 1.442695, %v838_v39  ;;  %v928_v52 = vmul.f32 1.442695, %v839_v40  ;;  %v539_v39 = vpop.f32.mrf.mxu0  ;;  %v652_v40 = vpop.f32.mrf.mxu1  ;;  %v799_v53 = vmax.f32 %v2102_v43, %v2104_v46 }
 0x29f   : > { %2806 = vst [vmem:[#allocation16_spill] sm:$0xff] %v2104_v46 }
 0x2a0   : > { %1555 = vpow2.f32 %v926_v49  ;;  %v748_v49 = vmax.f32 %v539_v39, %v652_v40 }
 0x2a1   : > { %1557 = vpow2.f32 %v928_v52  ;;  %v751_v52 = vmax.f32 %v1978_v41, %v1980_v42 }
 0x2a5   : > { %v2110_v13 = vpop.f32.mrf.mxu2  ;;  %v2112_v20 = vpop.f32.mrf.mxu3 }
 0x2a6   : > { %v2114_v25 = vpop.eup %1555  ;;  %v802_v44 = vmax.f32 %v2110_v13, %v2112_v20 }
 0x2a7   : > { %2807 = vst [vmem:[#allocation17_spill] sm:$0xff] %v2114_v25  ;;  %v2118_v45 = vpop.eup %1557 }
 0x2a8   : > { %2808 = vst [vmem:[#allocation18_spill] sm:$0xff] %v2118_v45  ;;  %803 = vmax.xlane.f32.xlu2 %v802_v44  ;;  %v1042_v38 = vadd.f32 %v2118_v45, %v2114_v25  ;;  %v742_v44 = vmax.f32 %v2096_v36, %v2098_v37  ;;  %v2150_v45 = vpop.xlane.xlu2 %758 }
 0x2aa   : > { %1043 = vadd.xlane.f32.xlu1 %v1042_v38  ;;  %v745_v38 = vmax.f32 %v2106_v57, %v2108_v62 }
 0x2ad   : > { %v2138_v25 = vpop.f32.mrf.mxu3 }
 0x2ae   : > { %2810 = vst [vmem:[#allocation20_spill] sm:$0xff] %v2138_v25 }
 0x2b0   : > { %749 = vmax.xlane.f32.xlu2 %v748_v49  ;;  %v790_v49 = vmax.f32 %v2080_v28, %v2082_v29 }
 0x2b3   : > { %v2154_v59 = vpop.xlane.xlu2 %764 }
 0x2b8   : > { %752 = vmax.xlane.f32.xlu2 %v751_v52  ;;  %v793_v52 = vmax.f32 %v2088_v32, %v2090_v33 }
 0x2c0   : > { %797 = vmax.xlane.f32.xlu2 %v796_v54  ;;  %v2136_v54 = vpop.f32.mrf.mxu2 }
 0x2c1   : > { %2809 = vst [vmem:[#allocation19_spill] sm:$0xff] %v2136_v54 }
 0x2c8   : > { %800 = vmax.xlane.f32.xlu2 %v799_v53  ;;  %v736_v53 = vmax.f32 %v2074_v26, %v2076_v27 }
 0x2d0   : > { %743 = vmax.xlane.f32.xlu2 %v742_v44  ;;  %v805_v44 = vmax.f32 %v2136_v54, %v2138_v25 }
 0x2d2   : > { %806 = vmax.xlane.f32.xlu0 %v805_v44  ;;  %v733_v44 = vmax.f32 %v2066_v21, %v2068_v22 }
 0x2d8   : > { %746 = vmax.xlane.f32.xlu2 %v745_v38  ;;  %v739_v38 = vmax.f32 %v2084_v30, %v2086_v31 }
 0x2e0   : > { %791 = vmax.xlane.f32.xlu2 %v790_v49  ;;  %v784_v49 = vmax.f32 %v2060_v18, %v2062_v19 }
 0x2e8   : > { %794 = vmax.xlane.f32.xlu2 %v793_v52  ;;  %v787_v52 = vmax.f32 %v2070_v23, %v2072_v24 }
 0x2f0   : > { %737 = vmax.xlane.f32.xlu2 %v736_v53  ;;  %v730_v53 = vmax.f32 %v2056_v16, %v2058_v17 }
 0x2f8   : > { %740 = vmax.xlane.f32.xlu2 %v739_v38 }
 0x300   : > { %785 = vmax.xlane.f32.xlu2 %v784_v49  ;;  %v778_v49 = vmax.f32 %v2046_v11, %v2048_v12 }
 0x308   : > { %788 = vmax.xlane.f32.xlu2 %v787_v52 }
 0x310   : > { %731 = vmax.xlane.f32.xlu2 %v730_v53  ;;  %v781_v53 = vmax.f32 %v2052_v14, %v2054_v15 }
 0x318   : > { %734 = vmax.xlane.f32.xlu2 %v733_v44  ;;  %v724_v44 = vmax.f32 %v2034_v5, %v2036_v6 }
 0x31b   : > { %v2158_v38 = vpop.xlane.xlu2 %803 }
 0x320   : > { %779 = vmax.xlane.f32.xlu2 %v778_v49 }
 0x323   : > { %v750_v58 = vpop.xlane.xlu2 %749 }
 0x324   : > { %v834_v52 = vsub.f32 %v539_v39, %v750_v58  ;;  %v835_v25 = vsub.f32 %v652_v40, %v750_v58  ;;  %v727_v39 = vmax.f32 %v2042_v9, %v2044_v10  ;;  %v772_v40 = vmax.f32 %v2030_v3, %v2032_v4 }
 0x326   : > { %v918_v54 = vmul.f32 1.442695, %v834_v52  ;;  %v920_v46 = vmul.f32 1.442695, %v835_v25 }
 0x328   : > { %1559 = vpow2.f32 %v918_v54  ;;  %782 = vmax.xlane.f32.xlu2 %v781_v53 }
 0x329   : > { %1561 = vpow2.f32 %v920_v46 }
 0x32b   : > { %v753_v43 = vpop.xlane.xlu2 %752 }
 0x32e   : > { %v2164_v29 = vpop.eup %1559 }
 0x32f   : > { %2811 = vst [vmem:[#allocation21_spill] sm:$0xff] %v2164_v29  ;;  %v2168_v28 = vpop.eup %1561 }
 0x330   : > { %725 = vmax.xlane.f32.xlu2 %v724_v44  ;;  %v1036_v58 = vadd.f32 %v2168_v28, %v2164_v29 }
 0x332   : > { %1037 = vadd.xlane.f32.xlu1 %v1036_v58  ;;  %v775_v58 = vmax.f32 %v2038_v7, %v2040_v8 }
 0x333   : > { %v2172_v25 = vpop.xlane.xlu2 %797 }
 0x338   : > { %728 = vmax.xlane.f32.xlu2 %v727_v39 }
 0x33b   : > { %v2176_v46 = vpop.xlane.xlu2 %800 }
 0x340   : > { %773 = vmax.xlane.f32.xlu2 %v772_v40 }
 0x343   : > { %v744_v54 = vpop.xlane.xlu2 %743 }
 0x344   : > { %v830_v49 = vsub.f32 %v2096_v36, %v744_v54  ;;  %v831_v52 = vsub.f32 %v2098_v37, %v744_v54  ;;  %v718_v36 = vmax.f32 %v2016_v60, %v2018_v61 }
 0x346   : > { %v910_v53 = vmul.f32 1.442695, %v830_v49  ;;  %v912_v44 = vmul.f32 1.442695, %v831_v52 }
 0x348   : > { %1563 = vpow2.f32 %v910_v53  ;;  %776 = vmax.xlane.f32.xlu2 %v775_v58 }
 0x349   : > { %1565 = vpow2.f32 %v912_v44 }
 0x34b   : > { %v747_v39 = vpop.xlane.xlu2 %746 }
 0x34c   : > { %v832_v29 = vsub.f32 %v2106_v57, %v747_v39  ;;  %v833_v10 = vsub.f32 %v2108_v62, %v747_v39  ;;  %v836_v57 = vsub.f32 %v1978_v41, %v753_v43  ;;  %v837_v62 = vsub.f32 %v1980_v42, %v753_v43  ;;  %v762_v39 = vpop.xlane.xlu1 %761 }
 0x34d   : > { %v769_v41 = vmax.f32 %v2022_v63, %v2024_v0 }
 0x34e   : > { %v2186_v9 = vpop.eup %1563  ;;  %v914_v40 = vmul.f32 1.442695, %v832_v29  ;;  %v916_v12 = vmul.f32 1.442695, %v833_v10  ;;  %v721_v10 = vmax.f32 %v2026_v1, %v2028_v2  ;;  %v922_v53 = vmul.f32 1.442695, %v836_v57 }
 0x34f   : > { %2812 = vst [vmem:[#allocation22_spill] sm:$0xff] %v2186_v9  ;;  %v2190_v37 = vpop.eup %1565  ;;  %v842_v57 = vsub.f32 %v1996_v50, %v762_v39 }
 0x350   : > { %1567 = vpow2.f32 %v914_v40  ;;  %719 = vmax.xlane.f32.xlu2 %v718_v36  ;;  %v1030_v54 = vadd.f32 %v2190_v37, %v2186_v9 }
 0x351   : > { %1569 = vpow2.f32 %v916_v12  ;;  %v924_v12 = vmul.f32 1.442695, %v837_v62 }
 0x352   : > { %1031 = vadd.xlane.f32.xlu0 %v1030_v54  ;;  %1571 = vpow2.f32 %v922_v53 }
 0x353   : > { %v2194_v49 = vpop.xlane.xlu2 %791  ;;  %1573 = vpow2.f32 %v924_v12  ;;  %v934_v12 = vmul.f32 1.442695, %v842_v57 }
 0x356   : > { %v2198_v29 = vpop.eup %1567 }
 0x357   : > { %2813 = vst [vmem:[#allocation23_spill] sm:$0xff] %v2198_v29  ;;  %v2202_v52 = vpop.eup %1569 }
 0x358   : > { %722 = vmax.xlane.f32.xlu2 %v721_v10  ;;  %v1033_v44 = vadd.f32 %v2202_v52, %v2198_v29  ;;  %v2210_v42 = vpop.eup %1571 }
 0x359   : > { %v2212_v43 = vpop.eup %1573 }
 0x35a   : > { %1034 = vadd.xlane.f32.xlu1 %v1033_v44  ;;  %v1039_v53 = vadd.f32 %v2212_v43, %v2210_v42  ;;  %v843_v44 = vsub.f32 %v1998_v51, %v762_v39 }
 0x35b   : > { %v2206_v58 = vpop.xlane.xlu2 %794 }
 0x360   : > { %770 = vmax.xlane.f32.xlu2 %v769_v41  ;;  %v936_v41 = vmul.f32 1.442695, %v843_v44  ;;  %v866_v44 = vsub.f32 %v2092_v34, %v2172_v25  ;;  %v841_v34 = vsub.f32 %v1992_v48, %v2150_v45 }
 0x362   : > { %v932_v48 = vmul.f32 1.442695, %v841_v34 }
 0x363   : > { %v738_v40 = vpop.xlane.xlu2 %737 }
 0x364   : > { %v826_v36 = vsub.f32 %v2074_v26, %v738_v40  ;;  %v827_v54 = vsub.f32 %v2076_v27, %v738_v40 }
 0x366   : > { %v902_v62 = vmul.f32 1.442695, %v826_v36  ;;  %v904_v10 = vmul.f32 1.442695, %v827_v54 }
 0x368   : > { %1575 = vpow2.f32 %v902_v62  ;;  %1040 = vadd.xlane.f32.xlu2 %v1039_v53 }
 0x369   : > { %1577 = vpow2.f32 %v904_v10 }
 0x36a   : > { %1579 = vpow2.f32 %v934_v12 }
 0x36b   : > { %v741_v9 = vpop.xlane.xlu2 %740  ;;  %1581 = vpow2.f32 %v936_v41 }
 0x36c   : > { %v828_v29 = vsub.f32 %v2084_v30, %v741_v9  ;;  %v829_v26 = vsub.f32 %v2086_v31, %v741_v9 }
 0x36e   : > { %v2222_v27 = vpop.eup %1575  ;;  %v906_v50 = vmul.f32 1.442695, %v828_v29  ;;  %v908_v40 = vmul.f32 1.442695, %v829_v26  ;;  %v867_v26 = vsub.f32 %v2094_v35, %v2172_v25  ;;  %v870_v35 = vsub.f32 %v2110_v13, %v2158_v38 }
 0x36f   : > { %v2224_v36 = vpop.eup %1577 }
 0x370   : > { %1583 = vpow2.f32 %v906_v50  ;;  %v1024_v51 = vadd.f32 %v2224_v36, %v2222_v27  ;;  %v2230_v54 = vpop.eup %1579  ;;  %v982_v50 = vmul.f32 1.442695, %v866_v44 }
 0x371   : > { %1585 = vpow2.f32 %v908_v40  ;;  %v2232_v30 = vpop.eup %1581  ;;  %v984_v40 = vmul.f32 1.442695, %v867_v26 }
 0x372   : > { %1025 = vadd.xlane.f32.xlu1 %v1024_v51  ;;  %v1048_v29 = vadd.f32 %v2232_v30, %v2230_v54 }
 0x373   : > { %v2228_v39 = vpop.xlane.xlu2 %785 }
 0x376   : > { %v2234_v9 = vpop.eup %1583 }
 0x377   : > { %v2236_v31 = vpop.eup %1585 }
 0x378   : > { %v1027_v57 = vadd.f32 %v2236_v31, %v2234_v9 }
 0x37a   : > { %1049 = vadd.xlane.f32.xlu1 %v1048_v29  ;;  %1028 = vadd.xlane.f32.xlu2 %v1027_v57  ;;  %v840_v29 = vsub.f32 %v1990_v47, %v2150_v45  ;;  %v871_v47 = vsub.f32 %v2112_v20, %v2158_v38  ;;  %v990_v45 = vmul.f32 1.442695, %v870_v35 }
 0x37b   : > { %v789_v62 = vpop.xlane.xlu2 %788 }
 0x37c   : > { %v860_v10 = vsub.f32 %v2070_v23, %v789_v62  ;;  %v861_v53 = vsub.f32 %v2072_v24, %v789_v62 }
 0x37e   : > { %v970_v12 = vmul.f32 1.442695, %v860_v10  ;;  %v972_v41 = vmul.f32 1.442695, %v861_v53  ;;  %v992_v53 = vmul.f32 1.442695, %v871_v47  ;;  %v864_v47 = vsub.f32 %v2088_v32, %v2206_v58 }
 0x380   : > { %1587 = vpow2.f32 %v970_v12  ;;  %v978_v32 = vmul.f32 1.442695, %v864_v47 }
 0x381   : > { %1589 = vpow2.f32 %v972_v41 }
 0x382   : > { %1591 = vpow2.f32 %v982_v50 }
 0x383   : > { %v732_v51 = vpop.xlane.xlu2 %731  ;;  %1593 = vpow2.f32 %v984_v40 }
 0x384   : > { %v822_v23 = vsub.f32 %v2056_v16, %v732_v51  ;;  %v823_v24 = vsub.f32 %v2058_v17, %v732_v51  ;;  %v930_v16 = vmul.f32 1.442695, %v840_v29  ;;  %v858_v51 = vsub.f32 %v2060_v18, %v2228_v39 }
 0x385   : > { %v859_v29 = vsub.f32 %v2062_v19, %v2228_v39 }
 0x386   : > { %v2254_v57 = vpop.eup %1587  ;;  %v894_v25 = vmul.f32 1.442695, %v822_v23  ;;  %v896_v62 = vmul.f32 1.442695, %v823_v24  ;;  %v966_v34 = vmul.f32 1.442695, %v858_v51  ;;  %v845_v51 = vsub.f32 %v2008_v56, %v2154_v59 }
 0x387   : > { %2814 = vst [vmem:[#allocation24_spill] sm:$0xff] %v2254_v57  ;;  %v2258_v10 = vpop.eup %1589  ;;  %v968_v19 = vmul.f32 1.442695, %v859_v29 }
 0x388   : > { %2815 = vst [vmem:[#allocation25_spill] sm:$0xff] %v2258_v10  ;;  %1595 = vpow2.f32 %v894_v25  ;;  %v1075_v17 = vadd.f32 %v2258_v10, %v2254_v57  ;;  %v2264_v44 = vpop.eup %1591  ;;  %v768_v10 = vpop.xlane.xlu1 %767 }
 0x389   : > { %1597 = vpow2.f32 %v896_v62  ;;  %v2268_v20 = vpop.eup %1593 }
 0x38a   : > { %1076 = vadd.xlane.f32.xlu1 %v1075_v17  ;;  %1599 = vpow2.f32 %v930_v16  ;;  %2816 = vst [vmem:[#allocation26_spill] sm:$0xff] %v2268_v20  ;;  %v865_v17 = vsub.f32 %v2090_v33, %v2206_v58  ;;  %v844_v33 = vsub.f32 %v2006_v55, %v2154_v59  ;;  %v2820_v59 = vld [vmem:[#allocation13_spill] sm:$0xff] }
 0x38b   : > { %v735_v13 = vpop.xlane.xlu2 %734  ;;  %1601 = vpow2.f32 %v932_v48 }
 0x38c   : > { %v824_v12 = vsub.f32 %v2066_v21, %v735_v13  ;;  %v825_v41 = vsub.f32 %v2068_v22, %v735_v13  ;;  %1603 = vpow2.f32 %v990_v45  ;;  %v1084_v21 = vadd.f32 %v2268_v20, %v2264_v44  ;;  %v2308_v13 = vpop.f32.mrf.mxu3 }
 0x38d   : > { %1605 = vpow2.f32 %v992_v53  ;;  %v2306_v53 = vpop.f32.mrf.mxu2  ;;  %v938_v29 = vmul.f32 1.442695, %v844_v33  ;;  %v2821_v33 = vld [vmem:[#allocation14_spill] sm:$0xff] }
 0x38e   : > { %v2270_v38 = vpop.eup %1595  ;;  %v898_v26 = vmul.f32 1.442695, %v824_v12  ;;  %v900_v50 = vmul.f32 1.442695, %v825_v41  ;;  %v980_v41 = vmul.f32 1.442695, %v865_v17 }
 0x38f   : > { %v2272_v40 = vpop.eup %1597 }
 0x390   : > { %1607 = vpow2.f32 %v898_v26  ;;  %v1018_v22 = vadd.f32 %v2272_v40, %v2270_v38  ;;  %v2282_v23 = vpop.eup %1599 }
 0x391   : > { %1609 = vpow2.f32 %v900_v50  ;;  %v2284_v24 = vpop.eup %1601  ;;  %v808_v50 = vmax.f32 %v2306_v53, %v2308_v13 }
 0x392   : > { %1085 = vadd.xlane.f32.xlu1 %v1084_v21  ;;  %1019 = vadd.xlane.f32.xlu2 %v1018_v22  ;;  %v2288_v18 = vpop.eup %1603  ;;  %1611 = vpow2.f32 %v966_v34  ;;  %v1045_v16 = vadd.f32 %v2284_v24, %v2282_v23  ;;  %v940_v34 = vmul.f32 1.442695, %v845_v51 }
 0x393   : > { %v2286_v35 = vpop.xlane.xlu2 %779  ;;  %v2290_v39 = vpop.eup %1605  ;;  %1613 = vpow2.f32 %v968_v19 }
 0x394   : > { %2817 = vst [vmem:[#allocation27_spill] sm:$0xff] %v2290_v39  ;;  %v1090_v48 = vadd.f32 %v2290_v39, %v2288_v18  ;;  %1615 = vpow2.f32 %v978_v32  ;;  %v2326_v19 = vpop.f32.mrf.mxu3 }
 0x395   : > { %1617 = vpow2.f32 %v980_v41  ;;  %v2324_v22 = vpop.f32.mrf.mxu2 }
 0x396   : > { %v2292_v25 = vpop.eup %1607  ;;  %1619 = vpow2.f32 %v938_v29  ;;  %v811_v41 = vmax.f32 %v2324_v22, %v2326_v19 }
 0x397   : > { %v2294_v62 = vpop.eup %1609  ;;  %1621 = vpow2.f32 %v940_v34  ;;  %v2822_v34 = vld [vmem:[#allocation15_spill] sm:$0xff] }
 0x398   : > { %v1021_v45 = vadd.f32 %v2294_v62, %v2292_v25  ;;  %v2312_v26 = vpop.eup %1611 }
 0x399   : > { %v2316_v58 = vpop.eup %1613 }
 0x39a   : > { %1091 = vadd.xlane.f32.xlu1 %v1090_v48  ;;  %1046 = vadd.xlane.f32.xlu2 %v1045_v16  ;;  %2818 = vst [vmem:[#allocation28_spill] sm:$0xff] %v2316_v58  ;;  %v1072_v21 = vadd.f32 %v2316_v58, %v2312_v26  ;;  %v2330_v17 = vpop.eup %1615  ;;  %v862_v48 = vsub.f32 %v2820_v59, %v2194_v49  ;;  %v2824_v59 = vld [vmem:[#allocation16_spill] sm:$0xff] }
 0x39b   : > { %1022 = vadd.xlane.f32.xlu0 %v1021_v45  ;;  %v2310_v12 = vpop.xlane.xlu2 %782  ;;  %v2332_v56 = vpop.eup %1617 }
 0x39c   : > { %2819 = vst [vmem:[#allocation29_spill] sm:$0xff] %v2332_v56  ;;  %v2342_v51 = vpop.eup %1619 }
 0x3a2   : > { %809 = vmax.xlane.f32.xlu2 %v808_v50  ;;  %v863_v50 = vsub.f32 %v2821_v33, %v2194_v49  ;;  %v868_v49 = vsub.f32 %v2822_v34, %v2176_v46 }
 0x3a3   : > { %1073 = vadd.xlane.f32.xlu0 %v1072_v21  ;;  %v726_v55 = vpop.xlane.xlu2 %725 }
 0x3a4   : > { %v818_v47 = vsub.f32 %v2034_v5, %v726_v55  ;;  %v819_v16 = vsub.f32 %v2036_v6, %v726_v55  ;;  %v1081_v5 = vadd.f32 %v2332_v56, %v2330_v17  ;;  %v974_v6 = vmul.f32 1.442695, %v862_v48  ;;  %v2346_v55 = vpop.eup %1621 }
 0x3a5   : > { %v976_v29 = vmul.f32 1.442695, %v863_v50  ;;  %v869_v48 = vsub.f32 %v2824_v59, %v2176_v46  ;;  %v807_v50 = vpop.xlane.xlu0 %806  ;;  %v2826_v46 = vld [vmem:[#allocation19_spill] sm:$0xff]  ;;  %v2827_v59 = vld [vmem:[#allocation20_spill] sm:$0xff] }
 0x3a6   : > { %v886_v45 = vmul.f32 1.442695, %v818_v47  ;;  %v888_v32 = vmul.f32 1.442695, %v819_v16  ;;  %v873_v58 = vsub.f32 %v2827_v59, %v807_v50 }
 0x3a7   : > { %v988_v33 = vmul.f32 1.442695, %v869_v48 }
 0x3a8   : > { %1623 = vpow2.f32 %v886_v45  ;;  %v1051_v45 = vadd.f32 %v2346_v55, %v2342_v51  ;;  %v996_v48 = vmul.f32 1.442695, %v873_v58 }
 0x3a9   : > { %1625 = vpow2.f32 %v888_v32 }
 0x3aa   : > { %812 = vmax.xlane.f32.xlu2 %v811_v41  ;;  %1627 = vpow2.f32 %v974_v6  ;;  %v986_v41 = vmul.f32 1.442695, %v868_v49 }
 0x3ab   : > { %1082 = vadd.xlane.f32.xlu0 %v1081_v5  ;;  %v2344_v21 = vpop.xlane.xlu2 %728  ;;  %1629 = vpow2.f32 %v976_v29  ;;  %v872_v29 = vsub.f32 %v2826_v46, %v807_v50  ;;  %v2376_v50 = vpop.xlane.xlu1 %1043 }
 0x3ac   : > { %1631 = vpow2.f32 %v986_v41 }
 0x3ad   : > { %1633 = vpow2.f32 %v988_v33  ;;  %v994_v49 = vmul.f32 1.442695, %v872_v29  ;;  %v2830_v33 = vld [vmem:[#allocation9_spill] sm:$0xff] }
 0x3ae   : > { %v2348_v47 = vpop.eup %1623  ;;  %v847_v46 = vsub.f32 %v2830_v33, %v768_v10 }
 0x3af   : > { %v2352_v16 = vpop.eup %1625  ;;  %1635 = vpow2.f32 %v994_v49 }
 0x3b0   : > { %2823 = vst [vmem:[#allocation13_spill] sm:$0xff] %v2352_v16  ;;  %v1012_v32 = vadd.f32 %v2352_v16, %v2348_v47  ;;  %v2360_v34 = vpop.eup %1627  ;;  %v2828_v16 = vld [vmem:[#allocation8_spill] sm:$0xff]  ;;  %1637 = vpow2.f32 %v996_v48 }
 0x3b1   : > { %v2362_v6 = vpop.eup %1629  ;;  %v846_v20 = vsub.f32 %v2828_v16, %v768_v10  ;;  %v857_v16 = vsub.f32 %v2054_v15, %v2310_v12 }
 0x3b2   : > { %1052 = vadd.xlane.f32.xlu2 %v1051_v45  ;;  %2825 = vst [vmem:[#allocation14_spill] sm:$0xff] %v2362_v6  ;;  %v1078_v56 = vadd.f32 %v2362_v6, %v2360_v34 }
 0x3b3   : > { %1013 = vadd.xlane.f32.xlu0 %v1012_v32  ;;  %v774_v5 = vpop.xlane.xlu2 %773  ;;  %v2368_v32 = vpop.eup %1631  ;;  %v942_v59 = vmul.f32 1.442695, %v846_v20 }
 0x3b4   : > { %v2373_v57 = vpop.eup %1633  ;;  %v850_v15 = vsub.f32 %v2030_v3, %v774_v5  ;;  %v851_v48 = vsub.f32 %v2032_v4, %v774_v5 }
 0x3b5   : > { %2829 = vst [vmem:[#allocation15_spill] sm:$0xff] %v2373_v57  ;;  %v2386_v33 = vpop.eup %1635 }
 0x3ba   : > { %1079 = vadd.xlane.f32.xlu2 %v1078_v56  ;;  %v856_v56 = vsub.f32 %v2052_v14, %v2310_v12  ;;  %v2388_v14 = vpop.eup %1637 }
 0x3bb   : > { %v777_v45 = vpop.xlane.xlu2 %776 }
 0x3bc   : > { %v852_v39 = vsub.f32 %v2038_v7, %v777_v45  ;;  %v853_v41 = vsub.f32 %v2040_v8, %v777_v45  ;;  %v1087_v7 = vadd.f32 %v2373_v57, %v2368_v32  ;;  %v944_v8 = vmul.f32 1.442695, %v847_v46 }
 0x3bd   : > { %v962_v10 = vmul.f32 1.442695, %v856_v56  ;;  %v964_v45 = vmul.f32 1.442695, %v857_v16  ;;  %v950_v56 = vmul.f32 1.442695, %v850_v15 }
 0x3be   : > { %v954_v58 = vmul.f32 1.442695, %v852_v39  ;;  %v956_v29 = vmul.f32 1.442695, %v853_v41  ;;  %v1038_v39 = vpop.xlane.xlu1 %1037  ;;  %v1093_v41 = vadd.f32 %v2388_v14, %v2386_v33  ;;  %v952_v16 = vmul.f32 1.442695, %v851_v48 }
 0x3c0   : > { %1639 = vpow2.f32 %v954_v58 }
 0x3c1   : > { %1641 = vpow2.f32 %v956_v29 }
 0x3c2   : > { %1088 = vadd.xlane.f32.xlu2 %v1087_v7  ;;  %1643 = vpow2.f32 %v942_v59 }
 0x3c3   : > { %v2384_v49 = vpop.xlane.xlu2 %719  ;;  %1645 = vpow2.f32 %v944_v8 }
 0x3c4   : > { %1647 = vpow2.f32 %v962_v10 }
 0x3c5   : > { %1649 = vpow2.f32 %v964_v45  ;;  %v1032_v58 = vpop.xlane.xlu0 %1031 }
 0x3c6   : > { %v2391_v20 = vpop.eup %1639  ;;  %1651 = vrcp.f32 %v1032_v58 }
 0x3c7   : > { %v2393_v12 = vpop.eup %1641  ;;  %1653 = vpow2.f32 %v950_v56 }
 0x3c8   : > { %2831 = vst [vmem:[#allocation16_spill] sm:$0xff] %v2393_v12  ;;  %v1063_v46 = vadd.f32 %v2393_v12, %v2391_v20  ;;  %v2400_v29 = vpop.eup %1643 }
 0x3c9   : > { %v2402_v3 = vpop.eup %1645 }
 0x3ca   : > { %1094 = vadd.xlane.f32.xlu2 %v1093_v41  ;;  %1064 = vadd.xlane.f32.xlu0 %v1063_v46  ;;  %2832 = vst [vmem:[#allocation19_spill] sm:$0xff] %v2402_v3  ;;  %v2404_v7 = vpop.eup %1647  ;;  %v1054_v15 = vadd.f32 %v2402_v3, %v2400_v29 }
 0x3cb   : > { %v723_v59 = vpop.xlane.xlu2 %722  ;;  %v2406_v4 = vpop.eup %1649 }
 0x3cc   : > { %2833 = vst [vmem:[#allocation20_spill] sm:$0xff] %v2406_v4  ;;  %v816_v8 = vsub.f32 %v2026_v1, %v723_v59  ;;  %v817_v10 = vsub.f32 %v2028_v2, %v723_v59  ;;  %v1069_v45 = vadd.f32 %v2406_v4, %v2404_v7  ;;  %v2414_v48 = vpop.eup %1651 }
 0x3cd   : > { %v1035_v5 = vpop.xlane.xlu1 %1034  ;;  %v2416_v46 = vpop.eup %1653  ;;  %v2426_v2 = vmul.f32 %v2414_v48, %v2190_v37 }
 0x3ce   : > { %1655 = vrcp.f32 %v1035_v5  ;;  %v882_v41 = vmul.f32 1.442695, %v816_v8  ;;  %v884_v56 = vmul.f32 1.442695, %v817_v10 }
 0x3cf   : > { %1657 = vpow2.f32 %v952_v16  ;;  %2835 = vst [vmem:[#allocation9_spill] sm:$0xff] %v2426_v2 }
 0x3d0   : > { %1659 = vpow2.f32 %v882_v41 }
 0x3d1   : > { %1661 = vpow2.f32 %v884_v56  ;;  %v1283_v56 = vld [vmem:[%s2756_s4] sm:$0xff] }
 0x3d2   : > { %1070 = vadd.xlane.f32.xlu2 %v1069_v45  ;;  %1055 = vadd.xlane.f32.xlu0 %v1054_v15  ;;  %1663 = vrcp.f32 %v1038_v39 }
 0x3d3   : > { %v2418_v58 = vpop.xlane.xlu2 %770 }
 0x3d4   : > { %v2420_v1 = vpop.eup %1655 }
 0x3d5   : > { %v2422_v16 = vpop.eup %1657  ;;  %v2430_v59 = vmul.f32 %v2420_v1, %v2202_v52 }
 0x3d6   : > { %2834 = vst [vmem:[#allocation8_spill] sm:$0xff] %v2422_v16  ;;  %v1060_v8 = vadd.f32 %v2422_v16, %v2416_v46  ;;  %v2436_v45 = vpop.eup %1659 }
 0x3d7   : > { %2836 = vst [vmem:[#allocation30_spill] sm:$0xff] %v2430_v59  ;;  %v2438_v37 = vpop.eup %1661 }
 0x3d8   : > { %2837 = vst [vmem:[#allocation31_spill] sm:$0xff] %v2438_v37  ;;  %v2440_v15 = vpop.eup %1663  ;;  %v1009_v52 = vadd.f32 %v2438_v37, %v2436_v45 }
 0x3d9   : > { %v2451_v39 = vmul.f32 %v2440_v15, %v2168_v28 }
 0x3da   : > { %1061 = vadd.xlane.f32.xlu2 %v1060_v8 }
 0x3db   : > { %v1041_v10 = vpop.xlane.xlu2 %1040 }
 0x3dc   : > { %1665 = vrcp.f32 %v1041_v10 }
 0x3e2   : > { %v2444_v41 = vpop.eup %1665  ;;  %1010 = vadd.xlane.f32.xlu2 %v1009_v52 }
 0x3e3   : > { %v2455_v8 = vmul.f32 %v2444_v41, %v2212_v43 }
 0x3e5   : > { %v1026_v5 = vpop.xlane.xlu1 %1025 }
 0x3e6   : > { %1286 = vperm.xlu0 %1553, %v1283_v56   ;;  %1667 = vrcp.f32 %v1026_v5 }
 0x3ec   : > { %v2459_v52 = vpop.eup %1667 }
 0x3ed   : > { %v1029_v3 = vpop.xlane.xlu2 %1028  ;;  %v2465_v28 = vmul.f32 %v2459_v52, %v2224_v36 }
 0x3ee   : > { %1669 = vrcp.f32 %v1029_v3 }
 0x3ef   : > { %2838 = vst [vmem:[#allocation32_spill] sm:$0xff] %v2465_v28 }
 0x3f4   : > { %v2461_v12 = vpop.eup %1669 }
 0x3f5   : > { %v2469_v43 = vmul.f32 %v2461_v12, %v2236_v31 }
 0x3f7   : > { %2839 = vst [vmem:[#allocation33_spill] sm:$0xff] %v2469_v43 }
 0x405   : > { %v1020_v56 = vpop.xlane.xlu2 %1019 }
 0x406   : > { %1671 = vrcp.f32 %v1020_v56 }
 0x407   : > { %1673 = vrcp.f32 %v2376_v50 }
 0x40c   : > { %v2474_v16 = vpop.eup %1671 }
 0x40d   : > { %v1047_v5 = vpop.xlane.xlu2 %1046  ;;  %v2476_v4 = vpop.eup %1673  ;;  %v2484_v56 = vmul.f32 %v2474_v16, %v2272_v40 }
 0x40e   : > { %v1023_v3 = vpop.xlane.xlu0 %1022 }
 0x40f   : > { %1675 = vrcp.f32 %v1023_v3  ;;  %2840 = vst [vmem:[#allocation34_spill] sm:$0xff] %v2484_v56 }
 0x410   : > { %1677 = vrcp.f32 %v1047_v5  ;;  %v2841_v5 = vld [vmem:[#allocation18_spill] sm:$0xff] }
 0x411   : > { %v2492_v3 = vmul.f32 %v2476_v4, %v2841_v5 }
 0x415   : > { %v2478_v36 = vpop.eup %1675  ;;  %v810_v37 = vpop.xlane.xlu2 %809 }
 0x416   : > { %v1678_v31 = vpop.eup %1677  ;;  %v874_v6 = vsub.f32 %v2306_v53, %v810_v37  ;;  %v875_v10 = vsub.f32 %v2308_v13, %v810_v37  ;;  %v2488_v50 = vmul.f32 %v2478_v36, %v2294_v62  ;;  %v854_v53 = vsub.f32 %v2046_v11, %v2286_v35  ;;  %v2842_v37 = vld [vmem:[#allocation12_spill] sm:$0xff] }
 0x417   : > { %v2495_v28 = vmul.f32 %v1678_v31, %v2284_v24  ;;  %v855_v57 = vsub.f32 %v2842_v37, %v2286_v35 }
 0x418   : > { %v998_v43 = vmul.f32 1.442695, %v874_v6  ;;  %v1000_v13 = vmul.f32 1.442695, %v875_v10  ;;  %v958_v5 = vmul.f32 1.442695, %v854_v53 }
 0x419   : > { %v1211_v62 = vpack.c.bf16 %v2495_v28, %v2492_v3  ;;  %v960_v2 = vmul.f32 1.442695, %v855_v57  ;;  %v2843_v10 = vld [vmem:[#allocation10_spill] sm:$0xff]  ;;  %v1050_v57 = vpop.xlane.xlu1 %1049  ;;  %v2852_v3 = vld [vmem:[#allocation7_spill] sm:$0xff] }
 0x41a   : > { %1679 = vpow2.f32 %v998_v43  ;;  %v820_v40 = vsub.f32 %v2843_v10, %v2344_v21  ;;  %v2844_v43 = vld [vmem:[#allocation11_spill] sm:$0xff] }
 0x41b   : > { %1681 = vpow2.f32 %v1000_v13  ;;  %v821_v53 = vsub.f32 %v2844_v43, %v2344_v21  ;;  %v814_v21 = vsub.f32 %v2016_v60, %v2384_v49 }
 0x41c   : > { %1683 = vpow2.f32 %v958_v5 }
 0x41d   : > { %v813_v24 = vpop.xlane.xlu2 %812  ;;  %1685 = vpow2.f32 %v960_v2  ;;  %v892_v13 = vmul.f32 1.442695, %v821_v53  ;;  %v878_v53 = vmul.f32 1.442695, %v814_v21  ;;  %v1160_v21 = vmul.f32 %v1678_v31, %v2282_v23 }
 0x41e   : > { %v876_v59 = vsub.f32 %v2324_v22, %v813_v24  ;;  %v877_v11 = vsub.f32 %v2326_v19, %v813_v24  ;;  %v890_v19 = vmul.f32 1.442695, %v820_v40  ;;  %v1156_v23 = vmul.f32 %v2444_v41, %v2210_v42 }
 0x420   : > { %v2507_v6 = vpop.eup %1679  ;;  %v1002_v56 = vmul.f32 1.442695, %v876_v59  ;;  %v1004_v35 = vmul.f32 1.442695, %v877_v11 }
 0x421   : > { %v2511_v37 = vpop.eup %1681 }
 0x422   : > { %1687 = vpow2.f32 %v1002_v56  ;;  %v1096_v22 = vadd.f32 %v2511_v37, %v2507_v6  ;;  %v2517_v24 = vpop.eup %1683  ;;  %v815_v56 = vsub.f32 %v2018_v61, %v2384_v49 }
 0x423   : > { %1689 = vpow2.f32 %v1004_v35  ;;  %v2519_v59 = vpop.eup %1685 }
 0x424   : > { %1691 = vrcp.f32 %v1050_v57  ;;  %1097 = vadd.xlane.f32.xlu1 %v1096_v22  ;;  %v1066_v10 = vadd.f32 %v2519_v59, %v2517_v24  ;;  %v880_v57 = vmul.f32 1.442695, %v815_v56 }
 0x425   : > { %v1053_v5 = vpop.xlane.xlu2 %1052 }
 0x426   : > { %1693 = vrcp.f32 %v1053_v5 }
 0x427   : > { %1695 = vpow2.f32 %v890_v19 }
 0x428   : > { %v2521_v2 = vpop.eup %1687  ;;  %1697 = vpow2.f32 %v892_v13 }
 0x429   : > { %v2527_v11 = vpop.eup %1689  ;;  %1699 = vpow2.f32 %v878_v53 }
 0x42a   : > { %v1692_v40 = vpop.eup %1691  ;;  %v1099_v35 = vadd.f32 %v2527_v11, %v2521_v2  ;;  %1701 = vpow2.f32 %v880_v57 }
 0x42b   : > { %v1162_v60 = vmul.f32 %v1692_v40, %v2230_v54  ;;  %v2535_v22 = vmul.f32 %v1692_v40, %v2232_v30  ;;  %v848_v54 = vsub.f32 %v2022_v63, %v2418_v58  ;;  %v849_v30 = vsub.f32 %v2024_v0, %v2418_v58  ;;  %v2846_v63 = vld [vmem:[#allocation21_spill] sm:$0xff] }
 0x42c   : > { %v1694_v43 = vpop.eup %1693  ;;  %1067 = vadd.xlane.f32.xlu1 %v1066_v10  ;;  %1100 = vadd.xlane.f32.xlu2 %v1099_v35 }
 0x42d   : > { %v1164_v61 = vmul.f32 %v1694_v43, %v2342_v51  ;;  %v2539_v49 = vmul.f32 %v1694_v43, %v2346_v55  ;;  %v2541_v19 = vpop.eup %1695  ;;  %v2845_v51 = vld [vmem:[#allocation17_spill] sm:$0xff]  ;;  %v946_v31 = vmul.f32 1.442695, %v848_v54  ;;  %v948_v35 = vmul.f32 1.442695, %v849_v30 }
 0x42e   : > { %v2543_v13 = vpop.eup %1697  ;;  %v1158_v55 = vmul.f32 %v2476_v4, %v2845_v51  ;;  %v1154_v43 = vmul.f32 %v2440_v15, %v2846_v63  ;;  %v2847_v4 = vld [vmem:[#allocation23_spill] sm:$0xff]  ;;  %v1148_v15 = vmul.f32 %v2461_v12, %v2234_v9  ;;  %v1142_v30 = vmul.f32 %v2474_v16, %v2270_v38  ;;  %v1074_v38 = vpop.xlane.xlu0 %1073 }
 0x42f   : > { %v1212_v5 = vpack.c.bf16 %v1164_v61, %v1162_v60  ;;  %v1213_v56 = vpack.c.bf16 %v2539_v49, %v2535_v22  ;;  %v1015_v40 = vadd.f32 %v2543_v13, %v2541_v19  ;;  %v2560_v53 = vpop.eup %1699  ;;  %v1152_v57 = vmul.f32 %v2420_v1, %v2847_v4  ;;  %v2848_v60 = vld [vmem:[#allocation22_spill] sm:$0xff]  ;;  %v256_v9 = vld [vmem:[%s2754_s2 + $0x8] sm:$0xf] }
 0x430   : > { %v1210_v10 = vpack.c.bf16 %v1160_v21, %v1158_v55  ;;  %v2562_v0 = vpop.eup %1701  ;;  %v1208_v58 = vpack.c.bf16 %v1156_v23, %v1154_v43  ;;  %1703 = vpow2.f32 %v946_v31  ;;  %v1150_v42 = vmul.f32 %v2414_v48, %v2848_v60 }
 0x431   : > { %1230 = vmatpush.bf16.msra.mxu0 %v1212_v5  ;;  %1705 = vpow2.f32 %v948_v35  ;;  %v1006_v41 = vadd.f32 %v2562_v0, %v2560_v53  ;;  %v1146_v5 = vmul.f32 %v2459_v52, %v2222_v27  ;;  %v1144_v48 = vmul.f32 %v2478_v36, %v2292_v25  ;;  %v1080_v52 = vpop.xlane.xlu2 %1079 }
 0x432   : > { %v1206_v61 = vpack.c.bf16 %v1152_v57, %v1150_v42  ;;  %v2851_v49 = vpack.c.bf16 %v2455_v8, %v2451_v39  ;;  %v2856_v39 = vld [vmem:[#allocation27_spill] sm:$0xff] }
 0x433   : > { %v1204_v54 = vpack.c.bf16 %v1148_v15, %v1146_v5  ;;  %v1202_v27 = vpack.c.bf16 %v1144_v48, %v1142_v30 }
 0x434   : > { %1016 = vadd.xlane.f32.xlu1 %v1015_v40  ;;  %v1077_v40 = vpop.xlane.xlu1 %1076 }
 0x435   : > { %1231 = vmatpush.bf16.msra.mxu0 %v1210_v10 }
 0x436   : > { %v2574_v21 = vpop.eup %1703  ;;  %v1083_v35 = vpop.xlane.xlu0 %1082 }
 0x437   : > { %v2576_v1 = vpop.eup %1705 }
 0x438   : > { %v1057_v12 = vadd.f32 %v2576_v1, %v2574_v21 }
 0x439   : > { %1232 = vmatpush.bf16.msra.mxu0 %v1208_v58  ;;  %v1089_v51 = vpop.xlane.xlu2 %1088 }
 0x43c   : > { %1007 = vadd.xlane.f32.xlu1 %v1006_v41  ;;  %v1086_v36 = vpop.xlane.xlu1 %1085 }
 0x43d   : > { %1233 = vmatpush.bf16.msra.mxu0 %v1206_v61 }
 0x43e   : > { %v1014_v58 = vpop.xlane.xlu0 %1013 }
 0x441   : > { %1234 = vmatpush.bf16.msra.mxu0 %v1204_v54  ;;  %v1095_v55 = vpop.xlane.xlu2 %1094 }
 0x444   : > { %1058 = vadd.xlane.f32.xlu1 %v1057_v12  ;;  %264 = vperm.xlu2 %1554, %v256_v9   ;;  %v1092_v23 = vpop.xlane.xlu1 %1091 }
 0x445   : > { %1235 = vmatpush.bf16.msra.mxu0 %v1202_v27 }
 0x446   : > { %v1065_v12 = vpop.xlane.xlu0 %1064 }
 0x449   : > { %v1071_v25 = vpop.xlane.xlu2 %1070 }
 0x451   : > { %v1062_v10 = vpop.xlane.xlu2 %1061 }
 0x459   : > { %v1011_v16 = vpop.xlane.xlu2 %1010 }
 0x497   : > { %v1098_v31 = vpop.xlane.xlu1 %1097 }
 0x498   : > { %1707 = vrcp.f32 %v1098_v31 }
 0x499   : > { %1709 = vrcp.f32 %v1095_v55 }
 0x49e   : > { %v2587_v4 = vpop.eup %1707 }
 0x49f   : > { %v1068_v63 = vpop.xlane.xlu1 %1067  ;;  %v1101_v43 = vpop.xlane.xlu2 %1100  ;;  %v1194_v41 = vmul.f32 %v2587_v4, %v2507_v6  ;;  %v1195_v28 = vmul.f32 %v2587_v4, %v2511_v37  ;;  %v2857_v37 = vld [vmem:[#allocation15_spill] sm:$0xff] }
 0x4a0   : > { %1711 = vrcp.f32 %v1101_v43  ;;  %v2589_v57 = vpop.eup %1709 }
 0x4a1   : > { %1713 = vrcp.f32 %v1092_v23  ;;  %v1192_v54 = vmul.f32 %v2589_v57, %v2386_v33 }
 0x4a2   : > { %1715 = vrcp.f32 %v1089_v51 }
 0x4a3   : > { %1717 = vrcp.f32 %v1014_v58 }
 0x4a4   : > { %1719 = vrcp.f32 %v1086_v36 }
 0x4a6   : > { %v2591_v60 = vpop.eup %1711 }
 0x4a7   : > { %v1017_v42 = vpop.xlane.xlu1 %1016  ;;  %v1196_v61 = vmul.f32 %v2591_v60, %v2521_v2  ;;  %v2597_v15 = vpop.eup %1713 }
 0x4a8   : > { %1721 = vrcp.f32 %v1017_v42  ;;  %v2601_v48 = vpop.eup %1715  ;;  %v1190_v6 = vmul.f32 %v2597_v15, %v2288_v18  ;;  %v1056_v42 = vpop.xlane.xlu0 %1055 }
 0x4a9   : > { %1723 = vrcp.f32 %v1080_v52  ;;  %v1228_v5 = vpack.c.bf16 %v1196_v61, %v1194_v41  ;;  %v2603_v30 = vpop.eup %1717  ;;  %v1188_v33 = vmul.f32 %v2601_v48, %v2368_v32  ;;  %v2849_v41 = vld [vmem:[#allocation6_spill] sm:$0xff]  ;;  %v2850_v61 = vld [vmem:[#allocation24_spill] sm:$0xff]  ;;  %v1189_v4 = vmul.f32 %v2601_v48, %v2857_v37  ;;  %v2865_v48 = vld [vmem:[#allocation13_spill] sm:$0xff] }
 0x4aa   : > { %1725 = vrcp.f32 %v1083_v35  ;;  %v2607_v9 = vpop.eup %1719  ;;  %v1226_v27 = vpack.c.bf16 %v1192_v54, %v1190_v6  ;;  %v1138_v55 = vmul.f32 %v2603_v30, %v2348_v47 }
 0x4ab   : > { %1243 = vmatpush.bf16.msra.mxu1 %v1228_v5  ;;  %1727 = vrcp.f32 %v1074_v38  ;;  %v1186_v36 = vmul.f32 %v2607_v9, %v2264_v44  ;;  %v265_v44 = vpop.permute.xlu2 %264 }
 0x4ac   : > { %1729 = vrcp.f32 %v1011_v16 }
 0x4ad   : > { %1731 = vrcp.f32 %v1077_v40  ;;  %v1224_v32 = vpack.c.bf16 %v1188_v33, %v1186_v36 }
 0x4ae   : > { %v2609_v2 = vpop.eup %1721 }
 0x4af   : > { %v2613_v52 = vpop.eup %1723  ;;  %v1008_v51 = vpop.xlane.xlu1 %1007  ;;  %v1140_v18 = vmul.f32 %v2609_v2, %v2541_v19  ;;  %1244 = vmatpush.bf16.msra.mxu1 %v1226_v27 }
 0x4b0   : > { %1733 = vrcp.f32 %v1008_v51  ;;  %v2621_v23 = vpop.eup %1725  ;;  %v1182_v40 = vmul.f32 %v2613_v52, %v2360_v34 }
 0x4b1   : > { %1735 = vrcp.f32 %v1068_v63  ;;  %v1200_v38 = vpack.c.bf16 %v1140_v18, %v1138_v55  ;;  %v2625_v16 = vpop.eup %1727  ;;  %v1184_v19 = vmul.f32 %v2621_v23, %v2330_v17 }
 0x4b2   : > { %1737 = vrcp.f32 %v1071_v25  ;;  %v2627_v47 = vpop.eup %1729  ;;  %v1178_v34 = vmul.f32 %v2625_v16, %v2312_v26 }
 0x4b3   : > { %1236 = vmatpush.bf16.msra.mxu0 %v1200_v38  ;;  %1245 = vmatpush.bf16.msra.mxu1 %v1224_v32  ;;  %v2631_v31 = vpop.eup %1731  ;;  %1739 = vrcp.f32 %v1062_v10  ;;  %v1222_v63 = vpack.c.bf16 %v1184_v19, %v1182_v40  ;;  %v1136_v17 = vmul.f32 %v2627_v47, %v2436_v45  ;;  %v295_v10 = vadd.f32 %v2849_v41, %v265_v44  ;;  %v2853_v32 = vld [vmem:[#allocation30_spill] sm:$0xff]  ;;  %v2858_v19 = vld [vmem:[#allocation33_spill] sm:$0xff] }
 0x4b4   : > { %1741 = vrcp.f32 %v1065_v12  ;;  %v1180_v5 = vmul.f32 %v2631_v31, %v2850_v61  ;;  %v1139_v41 = vmul.f32 %v2603_v30, %v2865_v48 }
 0x4b6   : > { %v2633_v35 = vpop.eup %1733  ;;  %v1220_v6 = vpack.c.bf16 %v1180_v5, %v1178_v34  ;;  %v1141_v34 = vmul.f32 %v2609_v2, %v2543_v13  ;;  %v2867_v2 = vld [vmem:[#allocation28_spill] sm:$0xff] }
 0x4b7   : > { %v2637_v43 = vpop.eup %1735  ;;  %v1059_v25 = vpop.xlane.xlu1 %1058  ;;  %v1134_v58 = vmul.f32 %v2633_v35, %v2560_v53  ;;  %1246 = vmatpush.bf16.msra.mxu1 %v1222_v63  ;;  %v320_v53 = vpack.c.bf16 %v295_v10, %v295_v10  ;;  %v2866_v10 = vld [vmem:[#allocation29_spill] sm:$0xff] }
 0x4b8   : > { %v2646_v54 = vpop.eup %1737  ;;  %1743 = vrcp.f32 %v1059_v25  ;;  %v1174_v12 = vmul.f32 %v2637_v43, %v2517_v24  ;;  %v1185_v61 = vmul.f32 %v2621_v23, %v2866_v10  ;;  %v1201_v5 = vpack.c.bf16 %v1141_v34, %v1139_v41 }
 0x4b9   : > { %v1198_v26 = vpack.c.bf16 %v1136_v17, %v1134_v58  ;;  %v1740_v27 = vpop.eup %1739  ;;  %1745 = vrcp.f32 %v1056_v42  ;;  %v1176_v45 = vmul.f32 %v2646_v54, %v2404_v7  ;;  %v1197_v7 = vmul.f32 %v2591_v60, %v2527_v11  ;;  %v2854_v11 = vld [vmem:[#allocation9_spill] sm:$0xff]  ;;  %v2862_v58 = vld [vmem:[#allocation14_spill] sm:$0xff] }
 0x4ba   : > { %v1742_v33 = vpop.eup %1741  ;;  %v1170_v55 = vmul.f32 %v1740_v27, %v2416_v46  ;;  %v2855_v60 = vpack.c.bf16 %v2853_v32, %v2854_v11  ;;  %v2863_v17 = vld [vmem:[#allocation34_spill] sm:$0xff]  ;;  %v1175_v23 = vmul.f32 %v2637_v43, %v2519_v59 }
 0x4bb   : > { %1237 = vmatpush.bf16.msra.mxu0 %v1198_v26  ;;  %1247 = vmatpush.bf16.msra.mxu1 %v1220_v6  ;;  %v1218_v51 = vpack.c.bf16 %v1176_v45, %v1174_v12  ;;  %v1172_v24 = vmul.f32 %v1742_v33, %v2391_v20  ;;  %v2864_v42 = vpack.c.bf16 %v2488_v50, %v2863_v17  ;;  %v2869_v6 = vld [vmem:[#allocation25_spill] sm:$0xff]  ;;  %v1747_v32 = vld [vmem:[%s1908_s16] sm:$0xff] }
 0x4bc   : > { %v1179_v26 = vmul.f32 %v2625_v16, %v2867_v2  ;;  %v1181_v30 = vmul.f32 %v2631_v31, %v2869_v6 }
 0x4bd   : > { %v1216_v38 = vpack.c.bf16 %v1172_v24, %v1170_v55 }
 0x4be   : > { %1238 = vmatmul.bf16.vlgmr.msra.gmra.mxu0 %v320_v53  ;;  %v1744_v18 = vpop.eup %1743  ;;  %v1221_v45 = vpack.c.bf16 %v1181_v30, %v1179_v26 }
 0x4bf   : > { %1256 = vmatpush.bf16.msrb.mxu0 %v1213_v56  ;;  %1248 = vmatpush.bf16.msra.mxu1 %v1218_v51  ;;  %v1746_v36 = vpop.eup %1745  ;;  %v1168_v22 = vmul.f32 %v1744_v18, %v2574_v21  ;;  %v1229_v56 = vpack.c.bf16 %v1197_v7, %v1195_v28  ;;  %v1193_v21 = vmul.f32 %v2589_v57, %v2388_v14  ;;  %v2861_v14 = vld [vmem:[#allocation26_spill] sm:$0xff]  ;;  %v2871_v51 = vld [vmem:[#allocation8_spill] sm:$0xff] }
 0x4c0   : > { %v1166_v46 = vmul.f32 %v1746_v36, %v2400_v29  ;;  %v1191_v29 = vmul.f32 %v2597_v15, %v2856_v39  ;;  %v1187_v57 = vmul.f32 %v2607_v9, %v2861_v14  ;;  %v1183_v15 = vmul.f32 %v2613_v52, %v2862_v58  ;;  %v2868_v52 = vld [vmem:[#allocation31_spill] sm:$0xff] }
 0x4c1   : > { %v1135_v9 = vmul.f32 %v2633_v35, %v2562_v0  ;;  %v1137_v50 = vmul.f32 %v2627_v47, %v2868_v52  ;;  %v2870_v0 = vld [vmem:[#allocation20_spill] sm:$0xff]  ;;  %v1171_v55 = vmul.f32 %v1740_v27, %v2871_v51  ;;  %v1169_v31 = vmul.f32 %v1744_v18, %v2576_v1  ;;  %v1282_v27 = vld [vmem:[%s2755_s3] sm:$0xff] }
 0x4c2   : > { %v1214_v20 = vpack.c.bf16 %v1168_v22, %v1166_v46  ;;  %v1227_v8 = vpack.c.bf16 %v1193_v21, %v1191_v29  ;;  %v1225_v25 = vpack.c.bf16 %v1189_v4, %v1187_v57  ;;  %v1223_v13 = vpack.c.bf16 %v1185_v61, %v1183_v15  ;;  %v2872_v47 = vld [vmem:[#allocation16_spill] sm:$0xff]  ;;  %v2873_v22 = vld [vmem:[#allocation19_spill] sm:$0xff] }
 0x4c3   : > { %1257 = vmatpush.bf16.msrb.mxu0 %v1211_v62  ;;  %1249 = vmatpush.bf16.msra.mxu1 %v1216_v38  ;;  %v318_v62 = vadd.f32 %v2852_v3, %v265_v44  ;;  %v2859_v44 = vld [vmem:[#allocation32_spill] sm:$0xff]  ;;  %v1199_v12 = vpack.c.bf16 %v1137_v50, %v1135_v9  ;;  %v1177_v35 = vmul.f32 %v2646_v54, %v2870_v0  ;;  %v1287_v3 = vpop.permute.xlu0 %1286  ;;  %v1748_v29 = vld [vmem:[%s1908_s16 + $0x8] sm:$0xff] }
 0x4c4   : > { %v2860_v63 = vpack.c.bf16 %v2858_v19, %v2859_v44  ;;  %v1173_v24 = vmul.f32 %v1742_v33, %v2872_v47  ;;  %v1167_v7 = vmul.f32 %v1746_v36, %v2873_v22 }
 0x4c5   : > { %v321_v40 = vpack.c.bf16 %v318_v62, %v318_v62  ;;  %v1219_v16 = vpack.c.bf16 %v1177_v35, %v1175_v23 }
 0x4c6   : > { %v1217_v38 = vpack.c.bf16 %v1173_v24, %v1171_v55 }
 0x4c7   : > { %1258 = vmatpush.bf16.msrb.mxu0 %v2851_v49  ;;  %1250 = vmatpush.bf16.msra.mxu1 %v1214_v20  ;;  %v1215_v49 = vpack.c.bf16 %v1169_v31, %v1167_v7  ;;  %v1339_v20 = vstv %s1338_s11 }
 0x4ca   : > { %1251 = vmatmul.bf16.vlgmr.msra.gmra.mxu1 %v321_v40 }
 0x4cb   : > { %1259 = vmatpush.bf16.msrb.mxu0 %v2855_v60  ;;  %1269 = vmatpush.bf16.msrb.mxu1 %v1229_v56 }
 0x4cf   : > { %1260 = vmatpush.bf16.msrb.mxu0 %v2860_v63  ;;  %1270 = vmatpush.bf16.msrb.mxu1 %v1227_v8 }
 0x4d3   : > { %1261 = vmatpush.bf16.msrb.mxu0 %v2864_v42  ;;  %1271 = vmatpush.bf16.msrb.mxu1 %v1225_v25 }
 0x4d7   : > { %1262 = vmatpush.bf16.msrb.mxu0 %v1201_v5  ;;  %1272 = vmatpush.bf16.msrb.mxu1 %v1223_v13 }
 0x4db   : > { %1263 = vmatpush.bf16.msrb.mxu0 %v1199_v12  ;;  %1273 = vmatpush.bf16.msrb.mxu1 %v1221_v45 }
 0x4de   : > { %1264 = vmatmul.bf16.vlgmr.msrb.gmra.mxu0 %v320_v53 }
 0x4df   : > { %1274 = vmatpush.bf16.msrb.mxu1 %v1219_v16 }
 0x4e3   : > { %1275 = vmatpush.bf16.msrb.mxu1 %v1217_v38 }
 0x4e7   : > { %1276 = vmatpush.bf16.msrb.mxu1 %v1215_v49 }
 0x4ea   : > { %1277 = vmatmul.bf16.vlgmr.msrb.gmra.mxu1 %v321_v40 }
 0x53b   : > { %v1239_v59 = vpop.f32.mrf.mxu0 }
 0x543   : > { %v1241_v43 = vpop.f32.mrf.mxu0 }
 0x547   : > { %v1252_v54 = vpop.f32.mrf.mxu1 }
 0x548   : > { %v1253_v53 = vadd.f32 %v1252_v54, %v1239_v59 }
 0x54a   : > { %1499 = vmatpush.msk.msra.mxu0 %vm487_vm1, %v1253_v53 }
 0x54b   : > { %1500 = vmatmul.msk.f32.vlgmr.msra.gmra.mxu0 %vm390_vm2, %v1282_v27 }
 0x54f   : > { %v1254_v1 = vpop.f32.mrf.mxu1 }
 0x55b   : > { %v1265_v33 = vpop.f32.mrf.mxu0 }
 0x563   : > { %v1267_v18 = vpop.f32.mrf.mxu0 }
 0x567   : > { %v1278_v36 = vpop.f32.mrf.mxu1 }
 0x568   : > { %v1279_v46 = vadd.f32 %v1278_v36, %v1265_v33 }
 0x56a   : > { %1501 = vmatpush.msk.msra.mxu1 %vm487_vm1, %v1279_v46 }
 0x56b   : > { %1502 = vmatmul.msk.f32.vlgmr.msra.gmra.mxu1 %vm390_vm2, %v1282_v27 }
 0x56f   : > { %v1280_v28 = vpop.f32.mrf.mxu1 }
 0x5c8   : > { %v1315_v62 = vpop.f32.mrf.mxu0 }
 0x5c9   : > { %v1316_v56 = vadd.f32 %v1315_v62, %v1287_v3 }
 0x5cb   : > { %v1340_v21 = vmul.f32 %v1339_v20, %v1316_v56 }
 0x5cd   : > { %v1342_v11 = vadd.f32 %v1747_v32, %v1340_v21 }
 0x5cf   : > { %1344 = vst [vmem:[%s245_s14] sm:$0xff] %v1342_v11 }
 0x5e8   : > { %v1335_v60 = vpop.f32.mrf.mxu1 }
 0x5e9   : > { %v1336_v40 = vadd.f32 %v1335_v60, %v1287_v3 }
 0x5eb   : > { %v1341_v39 = vmul.f32 %v1339_v20, %v1336_v40 }
 0x5ed   : > { %v1343_v8 = vadd.f32 %v1748_v29, %v1341_v39 }
 0x5ef   : > { %1345 = vst [vmem:[%s245_s14 + $0x8] sm:$0xff] %v1343_v8 }
 0x5f0   : > { %1776 = shalt.err (!%p1773_p3)
}
 0x5f1   : > { %1512 = dma.vmem_to_hbm [thread:$0]  (%p1890_p5), %s1361_s20, 256, %s1363_s21, %s1347_s22  }
 0x5f2 PF: > { %p1518_p4 = scmp.ge.s32.totalorder %s1811_s26, 2  ;;  %s1374_s16 = sand.u32 1, %s1799_s23  }
 0x5f3   : > { %s1375_s12 = scalar_lea.sflag [#allocation4], %s1374_s16 }
 0x5f4   : > { %p1515_p7 = pnand %p1518_p4, %p1894_p6 }
 0x5f6   : > { %p1516_p8 = pneg %p1515_p7 }
 0x5f8   : > { %1794 = dma.done.wait (%p1516_p8), %s1375_s12, 256  }
 0x5f9   : > { %1796 = vsyncadd (%p1516_p8), %s1375_s12, 4294967040  ;;  %p17_p9 = scmp.ge.s32.totalorder %s1877_s28, 4   ;;  %s2874_s23 = smov %s1803_s24 }
 0x5fa   : > { %s2875_s24 = smov %s1807_s25  ;;  %s2876_s25 = smov %s1888_s7 }
 0x5fb   : > { %s2877_s26 = smov %s1877_s28  ;;  %19 = sbr.rel (!%p17_p9) target bundleno = 5 (0x5), region = 79 }
 0x600   :  { %1381 = vsyncpa [#allocation4], 1 }
 0x601   :  { %1383 = vsyncpa [#allocation4 + $0x1], 1 }

</bundles_post_ra>
